<compile_context>
chip_gen: v7x
topology: tpu7x:2x2x1
jax: 0.10.0
libtpu: 0.0.40
codegen_flags: <defaults>
</compile_context>

<pallas_src>
import numpy as np
import jax
import jax.numpy as jnp
from jax.experimental import pallas as pl
from jax.experimental.pallas import tpu as pltpu


# ------------------------------ Pallas kernel -------------------------------

def _conv_block_kernel(x_ref, w1_ref, w2_ref, g1_ref, g2_ref, o_ref,
                       p1_ref, p2_ref):
    """Fused circular-pad conv1(stride) + ReLU + circular-pad conv2 + ReLU.

    One grid step processes NB batch elements packed along the lane axis.

    x_ref : (Cp, NB*HW)       bf16  input; channels padded to 8, batch in lanes
    w1_ref: (hp, F2*Cp)       bf16  conv1 weights (pre-scaled by 1/f)
    w2_ref: (hp, F2*hp)       bf16  conv2 weights (pre-scaled by 1/f)
    g1_ref: (F2, NB*HW, NB*S) bf16  per-tap 0/1 gather (circular pad + stride),
                                    block-diagonal over the packed batch
    g2_ref: (F2, NB*S, NB*S)  bf16  per-tap 0/1 gather for conv2 (stride 1)
    o_ref : (hp, NB*S)        f32   output (lane-dense: NB*S = 128 here)
    p1_ref: (F2*Cp, NB*S)     f32   scratch: stacked conv1 im2col patches
    p2_ref: (F2*hp, NB*S)     f32   scratch: stacked conv2 im2col patches
    """
    F2 = g1_ref.shape[0]
    Cp = x_ref.shape[0]
    hp = w1_ref.shape[0]

    # ---- conv1: gather each tap into an aligned (8, 128) slab of the scratch.
    # Gather results are exact copies of bf16(x) (0/1 matrix, f32 accumulate),
    # so the f32 scratch / bf16 round-trip below is lossless.
    x = x_ref[...]
    for k in range(F2):
        p1_ref[k * Cp:(k + 1) * Cp, :] = jnp.dot(
            x, g1_ref[k], preferred_element_type=jnp.float32)

    # Single fat weight matmul (hp, F2*Cp) @ (F2*Cp, NB*S) + ReLU.
    y1 = jnp.maximum(
        jnp.dot(w1_ref[...], p1_ref[...].astype(jnp.bfloat16),
                preferred_element_type=jnp.float32),
        0.0).astype(jnp.bfloat16)                       # (hp, NB*S), stays in VMEM

    # ---- conv2: same structure, stride 1, on the (Ho, Wo) grid.
    for k in range(F2):
        p2_ref[k * hp:(k + 1) * hp, :] = jnp.dot(
            y1, g2_ref[k], preferred_element_type=jnp.float32)

    o_ref[...] = jnp.maximum(
        jnp.dot(w2_ref[...], p2_ref[...].astype(jnp.bfloat16),
                preferred_element_type=jnp.float32),
        0.0)


# ------------------------------- JAX wrapper --------------------------------

def _round_up(a, b):
    return (a + b - 1) // b * b


def _pick_batch_block(N, S):
    """Batch elements packed per grid step so the output block is lane-dense."""
    nb = max(1, 128 // S) if S < 128 else 1
    while N % nb:                      # must evenly divide the batch
        nb -= 1
    return nb


def _build_gather_mats(H, W, f, stride, NB):
    """0/1 matrices implementing circular pad (left/top by f-1) + im2col.

    g1[k] is block-diagonal over the NB lane-packed batch elements:
      g1[k, n*HW + q, n*S + p] = 1  iff flat input index q feeds conv1 output
      position p for filter tap k (with stride).  g2 is the same for conv2
      (stride 1) on the (Ho, Wo) grid.  Exact in bf16 (values are 0/1).
    """
    Ho = (H - 1) // stride + 1
    Wo = (W - 1) // stride + 1
    S = Ho * Wo
    HW = H * W
    F2 = f * f

    g1 = np.zeros((F2, NB * HW, NB * S), np.float32)
    g2 = np.zeros((F2, NB * S, NB * S), np.float32)
    for ki in range(f):
        for kj in range(f):
            k = ki * f + kj
            for oi in range(Ho):
                for oj in range(Wo):
                    p = oi * Wo + oj
                    si = (oi * stride + ki - (f - 1)) % H
                    sj = (oj * stride + kj - (f - 1)) % W
                    ti = (oi + ki - (f - 1)) % Ho
                    tj = (oj + kj - (f - 1)) % Wo
                    for n in range(NB):
                        g1[k, n * HW + si * W + sj, n * S + p] = 1.0
                        g2[k, n * S + ti * Wo + tj, n * S + p] = 1.0
    return (jnp.asarray(g1, dtype=jnp.bfloat16),
            jnp.asarray(g2, dtype=jnp.bfloat16))


def _conv_block_forward(x, w1, w2, g1, g2, Ho, Wo, NB):
    N, C, H, W = x.shape
    h, _, f, _ = w1.shape
    F2 = f * f
    HW = H * W
    S = Ho * Wo
    Cp = _round_up(C, 8)
    hp = _round_up(h, 8)
    G = N // NB
    L = NB * S                                    # output lane width (128 here)

    # --- operand prep (tiny XLA glue, all hoisted out of the kernel) ---------
    # x: (N, C, H, W) -> (G, Cp, NB*HW): channels zero-padded to 8, batch
    # packed along the lane (last) axis of each group.
    xg = x.reshape(N, C, HW)
    xg = jnp.pad(xg, ((0, 0), (0, Cp - C), (0, 0)))
    xg = xg.reshape(G, NB, Cp, HW).transpose(0, 2, 1, 3).reshape(G, Cp, NB * HW)
    xg = xg.astype(jnp.bfloat16)

    # Weights: fold the 1/filter_size scaling, lay out as (hp, F2*Cpad) so one
    # matmul consumes the whole stacked patch scratch.  Padded rows/cols = 0.
    w1t = jnp.transpose(w1, (2, 3, 0, 1)).reshape(F2, h, C) / f
    w1cat = jnp.zeros((F2, hp, Cp), jnp.float32).at[:, :h, :C].set(w1t)
    w1cat = w1cat.transpose(1, 0, 2).reshape(hp, F2 * Cp).astype(jnp.bfloat16)

    w2t = jnp.transpose(w2, (2, 3, 0, 1)).reshape(F2, h, h) / f
    w2cat = jnp.zeros((F2, hp, hp), jnp.float32).at[:, :h, :h].set(w2t)
    w2cat = w2cat.transpose(1, 0, 2).reshape(hp, F2 * hp).astype(jnp.bfloat16)

    out = pl.pallas_call(
        _conv_block_kernel,
        out_shape=jax.ShapeDtypeStruct((G, hp, L), jnp.float32),
        grid=(G,),
        in_specs=[
            pl.BlockSpec((None, Cp, NB * HW), lambda g: (g, 0, 0)),   # per-group image
            # Grid-invariant operands: constant index maps keep them resident.
            pl.BlockSpec((hp, F2 * Cp), lambda g: (0, 0)),            # conv1 weights
            pl.BlockSpec((hp, F2 * hp), lambda g: (0, 0)),            # conv2 weights
            pl.BlockSpec((F2, NB * HW, L), lambda g: (0, 0, 0)),      # conv1 gathers
            pl.BlockSpec((F2, L, L), lambda g: (0, 0, 0)),            # conv2 gathers
        ],
        out_specs=pl.BlockSpec((None, hp, L), lambda g: (g, 0, 0)),
        scratch_shapes=[
            pltpu.VMEM((F2 * Cp, L), jnp.float32),    # stacked conv1 patches
            pltpu.VMEM((F2 * hp, L), jnp.float32),    # stacked conv2 patches
        ],
        compiler_params=pltpu.CompilerParams(
            dimension_semantics=("parallel",)),       # shard batch groups over TCs
    )(xg, w1cat, w2cat, g1, g2)

    # (G, hp, NB*S) -> (N, h, Ho, Wo); cheap reshapes on a tiny array.
    out = out.reshape(G, hp, NB, S).transpose(0, 2, 1, 3)
    return out.reshape(N, hp, Ho, Wo)[:, :h]


def make_conv_block(N, C, H, W, h, filter_size, stride):
    """Returns (jitted fn(x, w1, w2) -> (N, h, Ho, Wo), (Ho, Wo))."""
    Ho = (H - 1) // stride + 1
    Wo = (W - 1) // stride + 1
    NB = _pick_batch_block(N, Ho * Wo)
    g1, g2 = _build_gather_mats(H, W, filter_size, stride, NB)

    def fwd(x, w1, w2):
        return _conv_block_forward(x, w1, w2, g1, g2, Ho, Wo, NB)

    return jax.jit(fwd), (Ho, Wo)


# --------------------------- pure-JAX references ------------------------------

def _circ_conv(a, w, f, s):
    ap = jnp.pad(a, ((0, 0), (0, 0), (f - 1, 0), (f - 1, 0)), mode="wrap")
    return jax.lax.conv_general_dilated(
        ap, w, window_strides=(s, s), padding="VALID",
        dimension_numbers=("NCHW", "OIHW", "NCHW"),
        precision=jax.lax.Precision.HIGHEST)


def _conv_block_reference(x, w1, w2, stride):
    """Full-f32 reference (exact module semantics)."""
    f = w1.shape[-1]
    y = jnp.maximum(_circ_conv(x, w1 / f, f, stride), 0.0)
    y = jnp.maximum(_circ_conv(y, w2 / f, f, 1), 0.0)
    return y


def _conv_block_reference_bf16(x, w1, w2, stride):
    """Reference with the kernel's exact bf16 quantization points (x, w1/f,
    w2/f, and the intermediate activation), f32 accumulation everywhere."""
    f = w1.shape[-1]
    bf = lambda a: a.astype(jnp.bfloat16).astype(jnp.float32)
    y = jnp.maximum(_circ_conv(bf(x), bf(w1 / f), f, stride), 0.0)
    y = jnp.maximum(_circ_conv(bf(y), bf(w2 / f), f, 1), 0.0)
    return y


# ----------------------------------- main ------------------------------------

if __name__ == "__main__":
    # ConvBlock(input_dim=4, h=8, filter_size=3, stride=2) on a (2,4,16,16) input
    N, C, H, W = 2, 4, 16, 16
    h, f, stride = 8, 3, 2

    key = jax.random.PRNGKey(0)
    kx, k1, k2 = jax.random.split(key, 3)
    x = jax.random.normal(kx, (N, C, H, W), jnp.float32)
    w1 = jax.random.normal(k1, (h, C, f, f), jnp.float32)
    w2 = jax.random.normal(k2, (h, h, f, f), jnp.float32)

    fwd, (Ho, Wo) = make_conv_block(N, C, H, W, h, f, stride)
    out = fwd(x, w1, w2)
    jax.block_until_ready(out)
    assert out.shape == (N, h, Ho, Wo), out.shape

    # Tight structural check against the quantization-matched reference: any
    # gather / layout / batch-packing bug produces O(1) errors.  1e-3 (not
    # tighter) only because the intermediate ReLU->bf16 rounding cannot be made
    # bit-identical when the f32 accumulation order differs.
    ref_q = _conv_block_reference_bf16(x, w1, w2, stride)
    err_q = float(jnp.max(jnp.abs(out - ref_q)) / (jnp.max(jnp.abs(ref_q)) + 1e-6))
    assert err_q < 1e-3, f"mismatch vs bf16-quantized reference: rel_err={err_q}"

    # Sanity check against the full-f32 reference: bounds the bf16 x/w
    # quantization (expected ~1e-2 scale per the review; 2e-2 gives margin).
    ref = _conv_block_reference(x, w1, w2, stride)
    err = float(jnp.max(jnp.abs(out - ref)) / (jnp.max(jnp.abs(ref)) + 1e-6))
    assert err < 2e-2, f"mismatch vs f32 reference: rel_err={err}"

    print("KERNEL_OK")
</pallas_src>

<mosaic_0001>
module attributes {stable_mosaic.version = 11 : i64} {
  func.func @_conv_block_kernel(%arg0: i32, %arg1: memref<1x8x512xbf16, #tpu.memory_space<vmem>>, %arg2: memref<8x72xbf16, #tpu.memory_space<vmem>>, %arg3: memref<8x72xbf16, #tpu.memory_space<vmem>>, %arg4: memref<9x512x128xbf16, #tpu.memory_space<vmem>>, %arg5: memref<9x128x128xbf16, #tpu.memory_space<vmem>>, %arg6: memref<1x8x128xf32, #tpu.memory_space<vmem>>, %arg7: memref<72x128xf32, #tpu.memory_space<vmem>>, %arg8: memref<72x128xf32, #tpu.memory_space<vmem>>) attributes {dimension_semantics = [#tpu.dimension_semantics<parallel>], iteration_bounds = array<i64: 1>, scalar_prefetch = 0 : i64, scratch_operands = 2 : i64, tpu.core_type = #tpu.core_type<tc>, window_params = [{transform_indices = @transform_0, window_bounds = array<i64: 1, 8, 512>}, {pipeline_mode = #tpu.pipeline_mode<synchronous>, transform_indices = @transform_1, window_bounds = array<i64: 8, 72>}, {pipeline_mode = #tpu.pipeline_mode<synchronous>, transform_indices = @transform_2, window_bounds = array<i64: 8, 72>}, {pipeline_mode = #tpu.pipeline_mode<synchronous>, transform_indices = @transform_3, window_bounds = array<i64: 9, 512, 128>}, {pipeline_mode = #tpu.pipeline_mode<synchronous>, transform_indices = @transform_4, window_bounds = array<i64: 9, 128, 128>}, {transform_indices = @transform_5, window_bounds = array<i64: 1, 8, 128>}]} {
    %c0 = arith.constant 0 : index
    %c0_0 = arith.constant 0 : index
    %c0_1 = arith.constant 0 : index
    %0 = vector.load %arg1[%c0, %c0_0, %c0_1] : memref<1x8x512xbf16, #tpu.memory_space<vmem>>, vector<1x8x512xbf16>
    %1 = vector.shape_cast %0 : vector<1x8x512xbf16> to vector<8x512xbf16>
    %c0_2 = arith.constant 0 : index
    %c0_3 = arith.constant 0 : index
    %c0_4 = arith.constant 0 : index
    %2 = vector.load %arg4[%c0_2, %c0_3, %c0_4] : memref<9x512x128xbf16, #tpu.memory_space<vmem>>, vector<1x512x128xbf16>
    %3 = vector.shape_cast %2 : vector<1x512x128xbf16> to vector<512x128xbf16>
    %cst = arith.constant dense<0.000000e+00> : vector<8x128xf32>
    %4 = tpu.matmul %1, %3, %cst {dimension_numbers = #tpu.dot_dimension_numbers<[1], [0], [0], [1], [0, 0, 1, 1], [], []>} : vector<8x512xbf16>, vector<512x128xbf16>, vector<8x128xf32> -> vector<8x128xf32>
    %c0_5 = arith.constant 0 : index
    %c0_6 = arith.constant 0 : index
    %5 = vector.load %arg7[%c0_5, %c0_6] : memref<72x128xf32, #tpu.memory_space<vmem>>, vector<8x128xf32>
    tpu.vector_store %arg7[%c0_5, %c0_6], %4 {strides = array<i32>} : memref<72x128xf32, #tpu.memory_space<vmem>>, vector<8x128xf32>,
    %c1 = arith.constant 1 : index
    %c0_7 = arith.constant 0 : index
    %c0_8 = arith.constant 0 : index
    %6 = vector.load %arg4[%c1, %c0_7, %c0_8] : memref<9x512x128xbf16, #tpu.memory_space<vmem>>, vector<1x512x128xbf16>
    %7 = vector.shape_cast %6 : vector<1x512x128xbf16> to vector<512x128xbf16>
    %cst_9 = arith.constant dense<0.000000e+00> : vector<8x128xf32>
    %8 = tpu.matmul %1, %7, %cst_9 {dimension_numbers = #tpu.dot_dimension_numbers<[1], [0], [0], [1], [0, 0, 1, 1], [], []>} : vector<8x512xbf16>, vector<512x128xbf16>, vector<8x128xf32> -> vector<8x128xf32>
    %c8 = arith.constant 8 : index
    %c0_10 = arith.constant 0 : index
    %9 = vector.load %arg7[%c8, %c0_10] : memref<72x128xf32, #tpu.memory_space<vmem>>, vector<8x128xf32>
    tpu.vector_store %arg7[%c8, %c0_10], %8 {strides = array<i32>} : memref<72x128xf32, #tpu.memory_space<vmem>>, vector<8x128xf32>,
    %c2 = arith.constant 2 : index
    %c0_11 = arith.constant 0 : index
    %c0_12 = arith.constant 0 : index
    %10 = vector.load %arg4[%c2, %c0_11, %c0_12] : memref<9x512x128xbf16, #tpu.memory_space<vmem>>, vector<1x512x128xbf16>
    %11 = vector.shape_cast %10 : vector<1x512x128xbf16> to vector<512x128xbf16>
    %cst_13 = arith.constant dense<0.000000e+00> : vector<8x128xf32>
    %12 = tpu.matmul %1, %11, %cst_13 {dimension_numbers = #tpu.dot_dimension_numbers<[1], [0], [0], [1], [0, 0, 1, 1], [], []>} : vector<8x512xbf16>, vector<512x128xbf16>, vector<8x128xf32> -> vector<8x128xf32>
    %c16 = arith.constant 16 : index
    %c0_14 = arith.constant 0 : index
    %13 = vector.load %arg7[%c16, %c0_14] : memref<72x128xf32, #tpu.memory_space<vmem>>, vector<8x128xf32>
    tpu.vector_store %arg7[%c16, %c0_14], %12 {strides = array<i32>} : memref<72x128xf32, #tpu.memory_space<vmem>>, vector<8x128xf32>,
    %c3 = arith.constant 3 : index
    %c0_15 = arith.constant 0 : index
    %c0_16 = arith.constant 0 : index
    %14 = vector.load %arg4[%c3, %c0_15, %c0_16] : memref<9x512x128xbf16, #tpu.memory_space<vmem>>, vector<1x512x128xbf16>
    %15 = vector.shape_cast %14 : vector<1x512x128xbf16> to vector<512x128xbf16>
    %cst_17 = arith.constant dense<0.000000e+00> : vector<8x128xf32>
    %16 = tpu.matmul %1, %15, %cst_17 {dimension_numbers = #tpu.dot_dimension_numbers<[1], [0], [0], [1], [0, 0, 1, 1], [], []>} : vector<8x512xbf16>, vector<512x128xbf16>, vector<8x128xf32> -> vector<8x128xf32>
    %c24 = arith.constant 24 : index
    %c0_18 = arith.constant 0 : index
    %17 = vector.load %arg7[%c24, %c0_18] : memref<72x128xf32, #tpu.memory_space<vmem>>, vector<8x128xf32>
    tpu.vector_store %arg7[%c24, %c0_18], %16 {strides = array<i32>} : memref<72x128xf32, #tpu.memory_space<vmem>>, vector<8x128xf32>,
    %c4 = arith.constant 4 : index
    %c0_19 = arith.constant 0 : index
    %c0_20 = arith.constant 0 : index
    %18 = vector.load %arg4[%c4, %c0_19, %c0_20] : memref<9x512x128xbf16, #tpu.memory_space<vmem>>, vector<1x512x128xbf16>
    %19 = vector.shape_cast %18 : vector<1x512x128xbf16> to vector<512x128xbf16>
    %cst_21 = arith.constant dense<0.000000e+00> : vector<8x128xf32>
    %20 = tpu.matmul %1, %19, %cst_21 {dimension_numbers = #tpu.dot_dimension_numbers<[1], [0], [0], [1], [0, 0, 1, 1], [], []>} : vector<8x512xbf16>, vector<512x128xbf16>, vector<8x128xf32> -> vector<8x128xf32>
    %c32 = arith.constant 32 : index
    %c0_22 = arith.constant 0 : index
    %21 = vector.load %arg7[%c32, %c0_22] : memref<72x128xf32, #tpu.memory_space<vmem>>, vector<8x128xf32>
    tpu.vector_store %arg7[%c32, %c0_22], %20 {strides = array<i32>} : memref<72x128xf32, #tpu.memory_space<vmem>>, vector<8x128xf32>,
    %c5 = arith.constant 5 : index
    %c0_23 = arith.constant 0 : index
    %c0_24 = arith.constant 0 : index
    %22 = vector.load %arg4[%c5, %c0_23, %c0_24] : memref<9x512x128xbf16, #tpu.memory_space<vmem>>, vector<1x512x128xbf16>
    %23 = vector.shape_cast %22 : vector<1x512x128xbf16> to vector<512x128xbf16>
    %cst_25 = arith.constant dense<0.000000e+00> : vector<8x128xf32>
    %24 = tpu.matmul %1, %23, %cst_25 {dimension_numbers = #tpu.dot_dimension_numbers<[1], [0], [0], [1], [0, 0, 1, 1], [], []>} : vector<8x512xbf16>, vector<512x128xbf16>, vector<8x128xf32> -> vector<8x128xf32>
    %c40 = arith.constant 40 : index
    %c0_26 = arith.constant 0 : index
    %25 = vector.load %arg7[%c40, %c0_26] : memref<72x128xf32, #tpu.memory_space<vmem>>, vector<8x128xf32>
    tpu.vector_store %arg7[%c40, %c0_26], %24 {strides = array<i32>} : memref<72x128xf32, #tpu.memory_space<vmem>>, vector<8x128xf32>,
    %c6 = arith.constant 6 : index
    %c0_27 = arith.constant 0 : index
    %c0_28 = arith.constant 0 : index
    %26 = vector.load %arg4[%c6, %c0_27, %c0_28] : memref<9x512x128xbf16, #tpu.memory_space<vmem>>, vector<1x512x128xbf16>
    %27 = vector.shape_cast %26 : vector<1x512x128xbf16> to vector<512x128xbf16>
    %cst_29 = arith.constant dense<0.000000e+00> : vector<8x128xf32>
    %28 = tpu.matmul %1, %27, %cst_29 {dimension_numbers = #tpu.dot_dimension_numbers<[1], [0], [0], [1], [0, 0, 1, 1], [], []>} : vector<8x512xbf16>, vector<512x128xbf16>, vector<8x128xf32> -> vector<8x128xf32>
    %c48 = arith.constant 48 : index
    %c0_30 = arith.constant 0 : index
    %29 = vector.load %arg7[%c48, %c0_30] : memref<72x128xf32, #tpu.memory_space<vmem>>, vector<8x128xf32>
    tpu.vector_store %arg7[%c48, %c0_30], %28 {strides = array<i32>} : memref<72x128xf32, #tpu.memory_space<vmem>>, vector<8x128xf32>,
    %c7 = arith.constant 7 : index
    %c0_31 = arith.constant 0 : index
    %c0_32 = arith.constant 0 : index
    %30 = vector.load %arg4[%c7, %c0_31, %c0_32] : memref<9x512x128xbf16, #tpu.memory_space<vmem>>, vector<1x512x128xbf16>
    %31 = vector.shape_cast %30 : vector<1x512x128xbf16> to vector<512x128xbf16>
    %cst_33 = arith.constant dense<0.000000e+00> : vector<8x128xf32>
    %32 = tpu.matmul %1, %31, %cst_33 {dimension_numbers = #tpu.dot_dimension_numbers<[1], [0], [0], [1], [0, 0, 1, 1], [], []>} : vector<8x512xbf16>, vector<512x128xbf16>, vector<8x128xf32> -> vector<8x128xf32>
    %c56 = arith.constant 56 : index
    %c0_34 = arith.constant 0 : index
    %33 = vector.load %arg7[%c56, %c0_34] : memref<72x128xf32, #tpu.memory_space<vmem>>, vector<8x128xf32>
    tpu.vector_store %arg7[%c56, %c0_34], %32 {strides = array<i32>} : memref<72x128xf32, #tpu.memory_space<vmem>>, vector<8x128xf32>,
    %c8_35 = arith.constant 8 : index
    %c0_36 = arith.constant 0 : index
    %c0_37 = arith.constant 0 : index
    %34 = vector.load %arg4[%c8_35, %c0_36, %c0_37] : memref<9x512x128xbf16, #tpu.memory_space<vmem>>, vector<1x512x128xbf16>
    %35 = vector.shape_cast %34 : vector<1x512x128xbf16> to vector<512x128xbf16>
    %cst_38 = arith.constant dense<0.000000e+00> : vector<8x128xf32>
    %36 = tpu.matmul %1, %35, %cst_38 {dimension_numbers = #tpu.dot_dimension_numbers<[1], [0], [0], [1], [0, 0, 1, 1], [], []>} : vector<8x512xbf16>, vector<512x128xbf16>, vector<8x128xf32> -> vector<8x128xf32>
    %c64 = arith.constant 64 : index
    %c0_39 = arith.constant 0 : index
    %37 = vector.load %arg7[%c64, %c0_39] : memref<72x128xf32, #tpu.memory_space<vmem>>, vector<8x128xf32>
    tpu.vector_store %arg7[%c64, %c0_39], %36 {strides = array<i32>} : memref<72x128xf32, #tpu.memory_space<vmem>>, vector<8x128xf32>,
    %c0_40 = arith.constant 0 : index
    %c0_41 = arith.constant 0 : index
    %38 = vector.load %arg2[%c0_40, %c0_41] : memref<8x72xbf16, #tpu.memory_space<vmem>>, vector<8x72xbf16>
    %c0_42 = arith.constant 0 : index
    %c0_43 = arith.constant 0 : index
    %39 = vector.load %arg7[%c0_42, %c0_43] : memref<72x128xf32, #tpu.memory_space<vmem>>, vector<72x128xf32>
    %40 = arith.truncf %39 : vector<72x128xf32> to vector<72x128xbf16>
    %cst_44 = arith.constant dense<0.000000e+00> : vector<8x128xf32>
    %41 = tpu.matmul %38, %40, %cst_44 {dimension_numbers = #tpu.dot_dimension_numbers<[1], [0], [0], [1], [0, 0, 1, 1], [], []>} : vector<8x72xbf16>, vector<72x128xbf16>, vector<8x128xf32> -> vector<8x128xf32>
    %cst_45 = arith.constant 0.000000e+00 : f32
    %42 = vector.broadcast %cst_45 : f32 to vector<8x128xf32>
    %43 = arith.maximumf %41, %42 : vector<8x128xf32>
    %44 = arith.truncf %43 : vector<8x128xf32> to vector<8x128xbf16>
    %c0_46 = arith.constant 0 : index
    %c0_47 = arith.constant 0 : index
    %c0_48 = arith.constant 0 : index
    %45 = vector.load %arg5[%c0_46, %c0_47, %c0_48] : memref<9x128x128xbf16, #tpu.memory_space<vmem>>, vector<1x128x128xbf16>
    %46 = vector.shape_cast %45 : vector<1x128x128xbf16> to vector<128x128xbf16>
    %cst_49 = arith.constant dense<0.000000e+00> : vector<8x128xf32>
    %47 = tpu.matmul %44, %46, %cst_49 {dimension_numbers = #tpu.dot_dimension_numbers<[1], [0], [0], [1], [0, 0, 1, 1], [], []>} : vector<8x128xbf16>, vector<128x128xbf16>, vector<8x128xf32> -> vector<8x128xf32>
    %c0_50 = arith.constant 0 : index
    %c0_51 = arith.constant 0 : index
    %48 = vector.load %arg8[%c0_50, %c0_51] : memref<72x128xf32, #tpu.memory_space<vmem>>, vector<8x128xf32>
    tpu.vector_store %arg8[%c0_50, %c0_51], %47 {strides = array<i32>} : memref<72x128xf32, #tpu.memory_space<vmem>>, vector<8x128xf32>,
    %c1_52 = arith.constant 1 : index
    %c0_53 = arith.constant 0 : index
    %c0_54 = arith.constant 0 : index
    %49 = vector.load %arg5[%c1_52, %c0_53, %c0_54] : memref<9x128x128xbf16, #tpu.memory_space<vmem>>, vector<1x128x128xbf16>
    %50 = vector.shape_cast %49 : vector<1x128x128xbf16> to vector<128x128xbf16>
    %cst_55 = arith.constant dense<0.000000e+00> : vector<8x128xf32>
    %51 = tpu.matmul %44, %50, %cst_55 {dimension_numbers = #tpu.dot_dimension_numbers<[1], [0], [0], [1], [0, 0, 1, 1], [], []>} : vector<8x128xbf16>, vector<128x128xbf16>, vector<8x128xf32> -> vector<8x128xf32>
    %c8_56 = arith.constant 8 : index
    %c0_57 = arith.constant 0 : index
    %52 = vector.load %arg8[%c8_56, %c0_57] : memref<72x128xf32, #tpu.memory_space<vmem>>, vector<8x128xf32>
    tpu.vector_store %arg8[%c8_56, %c0_57], %51 {strides = array<i32>} : memref<72x128xf32, #tpu.memory_space<vmem>>, vector<8x128xf32>,
    %c2_58 = arith.constant 2 : index
    %c0_59 = arith.constant 0 : index
    %c0_60 = arith.constant 0 : index
    %53 = vector.load %arg5[%c2_58, %c0_59, %c0_60] : memref<9x128x128xbf16, #tpu.memory_space<vmem>>, vector<1x128x128xbf16>
    %54 = vector.shape_cast %53 : vector<1x128x128xbf16> to vector<128x128xbf16>
    %cst_61 = arith.constant dense<0.000000e+00> : vector<8x128xf32>
    %55 = tpu.matmul %44, %54, %cst_61 {dimension_numbers = #tpu.dot_dimension_numbers<[1], [0], [0], [1], [0, 0, 1, 1], [], []>} : vector<8x128xbf16>, vector<128x128xbf16>, vector<8x128xf32> -> vector<8x128xf32>
    %c16_62 = arith.constant 16 : index
    %c0_63 = arith.constant 0 : index
    %56 = vector.load %arg8[%c16_62, %c0_63] : memref<72x128xf32, #tpu.memory_space<vmem>>, vector<8x128xf32>
    tpu.vector_store %arg8[%c16_62, %c0_63], %55 {strides = array<i32>} : memref<72x128xf32, #tpu.memory_space<vmem>>, vector<8x128xf32>,
    %c3_64 = arith.constant 3 : index
    %c0_65 = arith.constant 0 : index
    %c0_66 = arith.constant 0 : index
    %57 = vector.load %arg5[%c3_64, %c0_65, %c0_66] : memref<9x128x128xbf16, #tpu.memory_space<vmem>>, vector<1x128x128xbf16>
    %58 = vector.shape_cast %57 : vector<1x128x128xbf16> to vector<128x128xbf16>
    %cst_67 = arith.constant dense<0.000000e+00> : vector<8x128xf32>
    %59 = tpu.matmul %44, %58, %cst_67 {dimension_numbers = #tpu.dot_dimension_numbers<[1], [0], [0], [1], [0, 0, 1, 1], [], []>} : vector<8x128xbf16>, vector<128x128xbf16>, vector<8x128xf32> -> vector<8x128xf32>
    %c24_68 = arith.constant 24 : index
    %c0_69 = arith.constant 0 : index
    %60 = vector.load %arg8[%c24_68, %c0_69] : memref<72x128xf32, #tpu.memory_space<vmem>>, vector<8x128xf32>
    tpu.vector_store %arg8[%c24_68, %c0_69], %59 {strides = array<i32>} : memref<72x128xf32, #tpu.memory_space<vmem>>, vector<8x128xf32>,
    %c4_70 = arith.constant 4 : index
    %c0_71 = arith.constant 0 : index
    %c0_72 = arith.constant 0 : index
    %61 = vector.load %arg5[%c4_70, %c0_71, %c0_72] : memref<9x128x128xbf16, #tpu.memory_space<vmem>>, vector<1x128x128xbf16>
    %62 = vector.shape_cast %61 : vector<1x128x128xbf16> to vector<128x128xbf16>
    %cst_73 = arith.constant dense<0.000000e+00> : vector<8x128xf32>
    %63 = tpu.matmul %44, %62, %cst_73 {dimension_numbers = #tpu.dot_dimension_numbers<[1], [0], [0], [1], [0, 0, 1, 1], [], []>} : vector<8x128xbf16>, vector<128x128xbf16>, vector<8x128xf32> -> vector<8x128xf32>
    %c32_74 = arith.constant 32 : index
    %c0_75 = arith.constant 0 : index
    %64 = vector.load %arg8[%c32_74, %c0_75] : memref<72x128xf32, #tpu.memory_space<vmem>>, vector<8x128xf32>
    tpu.vector_store %arg8[%c32_74, %c0_75], %63 {strides = array<i32>} : memref<72x128xf32, #tpu.memory_space<vmem>>, vector<8x128xf32>,
    %c5_76 = arith.constant 5 : index
    %c0_77 = arith.constant 0 : index
    %c0_78 = arith.constant 0 : index
    %65 = vector.load %arg5[%c5_76, %c0_77, %c0_78] : memref<9x128x128xbf16, #tpu.memory_space<vmem>>, vector<1x128x128xbf16>
    %66 = vector.shape_cast %65 : vector<1x128x128xbf16> to vector<128x128xbf16>
    %cst_79 = arith.constant dense<0.000000e+00> : vector<8x128xf32>
    %67 = tpu.matmul %44, %66, %cst_79 {dimension_numbers = #tpu.dot_dimension_numbers<[1], [0], [0], [1], [0, 0, 1, 1], [], []>} : vector<8x128xbf16>, vector<128x128xbf16>, vector<8x128xf32> -> vector<8x128xf32>
    %c40_80 = arith.constant 40 : index
    %c0_81 = arith.constant 0 : index
    %68 = vector.load %arg8[%c40_80, %c0_81] : memref<72x128xf32, #tpu.memory_space<vmem>>, vector<8x128xf32>
    tpu.vector_store %arg8[%c40_80, %c0_81], %67 {strides = array<i32>} : memref<72x128xf32, #tpu.memory_space<vmem>>, vector<8x128xf32>,
    %c6_82 = arith.constant 6 : index
    %c0_83 = arith.constant 0 : index
    %c0_84 = arith.constant 0 : index
    %69 = vector.load %arg5[%c6_82, %c0_83, %c0_84] : memref<9x128x128xbf16, #tpu.memory_space<vmem>>, vector<1x128x128xbf16>
    %70 = vector.shape_cast %69 : vector<1x128x128xbf16> to vector<128x128xbf16>
    %cst_85 = arith.constant dense<0.000000e+00> : vector<8x128xf32>
    %71 = tpu.matmul %44, %70, %cst_85 {dimension_numbers = #tpu.dot_dimension_numbers<[1], [0], [0], [1], [0, 0, 1, 1], [], []>} : vector<8x128xbf16>, vector<128x128xbf16>, vector<8x128xf32> -> vector<8x128xf32>
    %c48_86 = arith.constant 48 : index
    %c0_87 = arith.constant 0 : index
    %72 = vector.load %arg8[%c48_86, %c0_87] : memref<72x128xf32, #tpu.memory_space<vmem>>, vector<8x128xf32>
    tpu.vector_store %arg8[%c48_86, %c0_87], %71 {strides = array<i32>} : memref<72x128xf32, #tpu.memory_space<vmem>>, vector<8x128xf32>,
    %c7_88 = arith.constant 7 : index
    %c0_89 = arith.constant 0 : index
    %c0_90 = arith.constant 0 : index
    %73 = vector.load %arg5[%c7_88, %c0_89, %c0_90] : memref<9x128x128xbf16, #tpu.memory_space<vmem>>, vector<1x128x128xbf16>
    %74 = vector.shape_cast %73 : vector<1x128x128xbf16> to vector<128x128xbf16>
    %cst_91 = arith.constant dense<0.000000e+00> : vector<8x128xf32>
    %75 = tpu.matmul %44, %74, %cst_91 {dimension_numbers = #tpu.dot_dimension_numbers<[1], [0], [0], [1], [0, 0, 1, 1], [], []>} : vector<8x128xbf16>, vector<128x128xbf16>, vector<8x128xf32> -> vector<8x128xf32>
    %c56_92 = arith.constant 56 : index
    %c0_93 = arith.constant 0 : index
    %76 = vector.load %arg8[%c56_92, %c0_93] : memref<72x128xf32, #tpu.memory_space<vmem>>, vector<8x128xf32>
    tpu.vector_store %arg8[%c56_92, %c0_93], %75 {strides = array<i32>} : memref<72x128xf32, #tpu.memory_space<vmem>>, vector<8x128xf32>,
    %c8_94 = arith.constant 8 : index
    %c0_95 = arith.constant 0 : index
    %c0_96 = arith.constant 0 : index
    %77 = vector.load %arg5[%c8_94, %c0_95, %c0_96] : memref<9x128x128xbf16, #tpu.memory_space<vmem>>, vector<1x128x128xbf16>
    %78 = vector.shape_cast %77 : vector<1x128x128xbf16> to vector<128x128xbf16>
    %cst_97 = arith.constant dense<0.000000e+00> : vector<8x128xf32>
    %79 = tpu.matmul %44, %78, %cst_97 {dimension_numbers = #tpu.dot_dimension_numbers<[1], [0], [0], [1], [0, 0, 1, 1], [], []>} : vector<8x128xbf16>, vector<128x128xbf16>, vector<8x128xf32> -> vector<8x128xf32>
    %c64_98 = arith.constant 64 : index
    %c0_99 = arith.constant 0 : index
    %80 = vector.load %arg8[%c64_98, %c0_99] : memref<72x128xf32, #tpu.memory_space<vmem>>, vector<8x128xf32>
    tpu.vector_store %arg8[%c64_98, %c0_99], %79 {strides = array<i32>} : memref<72x128xf32, #tpu.memory_space<vmem>>, vector<8x128xf32>,
    %c0_100 = arith.constant 0 : index
    %c0_101 = arith.constant 0 : index
    %81 = vector.load %arg3[%c0_100, %c0_101] : memref<8x72xbf16, #tpu.memory_space<vmem>>, vector<8x72xbf16>
    %c0_102 = arith.constant 0 : index
    %c0_103 = arith.constant 0 : index
    %82 = vector.load %arg8[%c0_102, %c0_103] : memref<72x128xf32, #tpu.memory_space<vmem>>, vector<72x128xf32>
    %83 = arith.truncf %82 : vector<72x128xf32> to vector<72x128xbf16>
    %cst_104 = arith.constant dense<0.000000e+00> : vector<8x128xf32>
    %84 = tpu.matmul %81, %83, %cst_104 {dimension_numbers = #tpu.dot_dimension_numbers<[1], [0], [0], [1], [0, 0, 1, 1], [], []>} : vector<8x72xbf16>, vector<72x128xbf16>, vector<8x128xf32> -> vector<8x128xf32>
    %cst_105 = arith.constant 0.000000e+00 : f32
    %85 = vector.broadcast %cst_105 : f32 to vector<8x128xf32>
    %86 = arith.maximumf %84, %85 : vector<8x128xf32>
    %c0_106 = arith.constant 0 : index
    %c0_107 = arith.constant 0 : index
    %c0_108 = arith.constant 0 : index
    %87 = vector.load %arg6[%c0_106, %c0_107, %c0_108] : memref<1x8x128xf32, #tpu.memory_space<vmem>>, vector<1x8x128xf32>
    %88 = vector.shape_cast %87 : vector<1x8x128xf32> to vector<8x128xf32>
    %89 = vector.shape_cast %86 : vector<8x128xf32> to vector<1x8x128xf32>
    tpu.vector_store %arg6[%c0_106, %c0_107, %c0_108], %89 {strides = array<i32>} : memref<1x8x128xf32, #tpu.memory_space<vmem>>, vector<1x8x128xf32>,
    return
  }
  func.func @transform_0(%arg0: i32) -> (i32, i32, i32) {
    %c0_i32 = arith.constant 0 : i32
    %c0_i32_0 = arith.constant 0 : i32
    %c0_i32_1 = arith.constant 0 : i32
    return %arg0, %c0_i32, %c0_i32_0 : i32, i32, i32
  }
  func.func @transform_1(%arg0: i32) -> (i32, i32) {
    %c0_i32 = arith.constant 0 : i32
    %c0_i32_0 = arith.constant 0 : i32
    %c0_i32_1 = arith.constant 0 : i32
    return %c0_i32, %c0_i32_0 : i32, i32
  }
  func.func @transform_2(%arg0: i32) -> (i32, i32) {
    %c0_i32 = arith.constant 0 : i32
    %c0_i32_0 = arith.constant 0 : i32
    %c0_i32_1 = arith.constant 0 : i32
    return %c0_i32, %c0_i32_0 : i32, i32
  }
  func.func @transform_3(%arg0: i32) -> (i32, i32, i32) {
    %c0_i32 = arith.constant 0 : i32
    %c0_i32_0 = arith.constant 0 : i32
    %c0_i32_1 = arith.constant 0 : i32
    %c0_i32_2 = arith.constant 0 : i32
    return %c0_i32, %c0_i32_0, %c0_i32_1 : i32, i32, i32
  }
  func.func @transform_4(%arg0: i32) -> (i32, i32, i32) {
    %c0_i32 = arith.constant 0 : i32
    %c0_i32_0 = arith.constant 0 : i32
    %c0_i32_1 = arith.constant 0 : i32
    %c0_i32_2 = arith.constant 0 : i32
    return %c0_i32, %c0_i32_0, %c0_i32_1 : i32, i32, i32
  }
  func.func @transform_5(%arg0: i32) -> (i32, i32, i32) {
    %c0_i32 = arith.constant 0 : i32
    %c0_i32_0 = arith.constant 0 : i32
    %c0_i32_1 = arith.constant 0 : i32
    return %arg0, %c0_i32, %c0_i32_0 : i32, i32, i32
  }
}

</mosaic_0001>

<bundles_post_ra>
// kernel: fwd.1
= control target key start
LH: loop header
LB: loop body
LE: loop exit
PB: predicated region body
PF: predicated region fallthrough
CT: control target
= control target key end

     0   :  { %10 = vsyncpa [#allocation5], 0  ;;  %s5915_s0 = inlined_call_operand.vmem [shape: bf16[1,8,512], index: 0, kind: input, shape index: {}]   ;;  %s5916_s1 = inlined_call_operand.vmem [shape: bf16[8,72], index: 1, kind: input, shape index: {}]   ;;  %s5917_s2 = inlined_call_operand.vmem [shape: bf16[8,72], index: 2, kind: input, shape index: {}]   ;;  %s5918_s3 = inlined_call_operand.hbm [shape: bf16[9,512,128], index: 3, kind: input, shape index: {}]   ;;  %s5919_s4 = inlined_call_operand.hbm [shape: bf16[9,128,128], index: 4, kind: input, shape index: {}]   ;;  %s5920_s5 = inlined_call_operand.vmem [shape: f32[1,8,128], index: 5, kind: output, shape index: {}]  }
   0x1   :  { %11 = vsyncpa [#allocation7], 0  ;;  %s5674_s18 = smov [#allocation4]   ;;  %s5626_s22 = scalar_lea.hbm %s5918_s3, 36864 }
   0x2   :  { %s23_s19 = sshll.u32 %s5674_s18, 4  ;;  %p5627_p0 = scmp.ne.s32.totalorder %s5918_s3, %s5626_s22  ;;  %s24_s19 = int_to_ptr.vmem [resolvable:$true] %s23_s19 }
   0x3   :  { %p5630_p1 = scmp.lt.u32.totalorder %s5626_s22, %s5918_s3 }
   0x5   :  { %p5632_p2 = pnand %p5630_p1, %p5627_p0 }
   0x7   :  { %5635 = shalt.err (!%p5632_p2)
}
   0x8   :  { %s5636_s27 = scalar_lea.vmem %s24_s19, 36864  ;;  %p5641_p4 = scmp.lt.s32.totalorder %s24_s19, %s24_s19 }
   0x9   :  { %p5637_p3 = scmp.ne.s32.totalorder %s24_s19, %s5636_s27  ;;  %p5642_p5 = scmp.lt.s32.totalorder %s5636_s27, %s5636_s27 }
   0xb   :  { %p5643_p6 = por %p5642_p5, %p5641_p4 }
   0xd   :  { %p5644_p7 = pnand %p5643_p6, %p5637_p3 }
   0xf   :  { %5647 = shalt.err (!%p5644_p7)
}
  0x10   :  { %s5675_s28 = smov 64   ;;  %s5676_s29 = smov 4  }
  0x11   :  { %29 = dma.hbm_to_vmem [thread:$0]  %s5918_s3, 36864, %s24_s19, [#allocation5], %s5675_s28, %s5675_s28, %s5676_s29  }
  0x12   :  { %s5677_s7 = smov [#allocation6]   ;;  %s5648_s11 = scalar_lea.hbm %s5919_s4, 9216 }
  0x13   :  { %s35_s8 = sshll.u32 %s5677_s7, 4  ;;  %p5649_p8 = scmp.ne.s32.totalorder %s5919_s4, %s5648_s11  ;;  %s36_s8 = int_to_ptr.vmem [resolvable:$true] %s35_s8 }
  0x14   :  { %p5652_p9 = scmp.lt.u32.totalorder %s5648_s11, %s5919_s4 }
  0x16   :  { %p5654_p10 = pnand %p5652_p9, %p5649_p8 }
  0x18   :  { %5657 = shalt.err (!%p5654_p10)
}
  0x19   :  { %s5658_s16 = scalar_lea.vmem %s36_s8, 9216  ;;  %p5663_p12 = scmp.lt.s32.totalorder %s36_s8, %s36_s8 }
  0x1a   :  { %p5659_p11 = scmp.ne.s32.totalorder %s36_s8, %s5658_s16  ;;  %p5664_p13 = scmp.lt.s32.totalorder %s5658_s16, %s5658_s16 }
  0x1c   :  { %p5665_p0 = por %p5664_p13, %p5663_p12 }
  0x1e   :  { %p5666_p1 = pnand %p5665_p0, %p5659_p11 }
  0x20   :  { %5669 = shalt.err (!%p5666_p1)
}
  0x21   :  { %41 = dma.hbm_to_vmem [thread:$0]  %s5919_s4, 9216, %s36_s8, [#allocation7], %s5675_s28, %s5675_s28, %s5676_s29  }
  0x22   :  { %5670 = dma.done.wait [#allocation5], 36864  }
  0x23   :  { %5671 = vsyncadd [#allocation5], 4294930432 }
  0x24   :  { %5672 = dma.done.wait [#allocation7], 9216  }
  0x25   :  { %5673 = vsyncadd [#allocation7], 4294958080  ;;  %v5262_v0 = vld [vmem:[#allocation4 + $0x40] sm:$0xff]   ;;  %v5266_v4 = vld [vmem:[#allocation4 + $0x48] sm:$0xff]   ;;  %vm5679_vm0 = vmmov 0   ;;  %vm3125_vm1 = vcmask 1043456  }
  0x26   :  { %v5263_v1 = vld [vmem:[#allocation4 + $0xc0] sm:$0xff]   ;;  %4559 = vmatprep.subr.bf16.mxu0 %v5262_v0  ;;  %v5267_v5 = vld [vmem:[#allocation4 + $0xc8] sm:$0xff]   ;;  %v5270_v8 = vld [vmem:[#allocation4 + $0x50] sm:$0xff]   ;;  %vm3121_vm2 = vcmask 588800  }
  0x27   :  { %v5264_v2 = vld [vmem:[#allocation4] sm:$0xff]   ;;  %4581 = vmatprep.subr.bf16.mxu1 %v5263_v1  ;;  %v5268_v6 = vld [vmem:[#allocation4 + $0x8] sm:$0xff]   ;;  %v5271_v9 = vld [vmem:[#allocation4 + $0xd0] sm:$0xff]  }
  0x28   :  { %v5265_v3 = vld [vmem:[#allocation4 + $0x80] sm:$0xff]   ;;  %4560 = vmatpush3.bf16.msra.mxu0 %v5264_v2  ;;  %v5269_v7 = vld [vmem:[#allocation4 + $0x88] sm:$0xff]   ;;  %v5272_v10 = vld [vmem:[#allocation4 + $0x10] sm:$0xff]  }
  0x29   :  { %4582 = vmatpush3.bf16.msra.mxu1 %v5265_v3  ;;  %4561 = vmatprep.subr.bf16.mxu0 %v5266_v4  ;;  %v5273_v11 = vld [vmem:[#allocation4 + $0x90] sm:$0xff]   ;;  %v5274_v12 = vld [vmem:[#allocation4 + $0x58] sm:$0xff]   ;;  %v5278_v16 = vld [vmem:[#allocation4 + $0x60] sm:$0xff]  }
  0x2a   :  { %4583 = vmatprep.subr.bf16.mxu1 %v5267_v5  ;;  %v5275_v13 = vld [vmem:[#allocation4 + $0xd8] sm:$0xff]   ;;  %v5279_v17 = vld [vmem:[#allocation4 + $0xe0] sm:$0xff]   ;;  %v5282_v20 = vld [vmem:[#allocation4 + $0x68] sm:$0xff]  }
  0x2b   :  { %v5276_v14 = vld [vmem:[#allocation4 + $0x18] sm:$0xff]   ;;  %v5280_v18 = vld [vmem:[#allocation4 + $0x20] sm:$0xff]   ;;  %v5283_v21 = vld [vmem:[#allocation4 + $0xe8] sm:$0xff]  }
  0x2c   :  { %4562 = vmatpush3.bf16.msra.mxu0 %v5268_v6  ;;  %v5277_v15 = vld [vmem:[#allocation4 + $0x98] sm:$0xff]   ;;  %v5281_v19 = vld [vmem:[#allocation4 + $0xa0] sm:$0xff]   ;;  %v5284_v22 = vld [vmem:[#allocation4 + $0x28] sm:$0xff]  }
  0x2d   :  { %4584 = vmatpush3.bf16.msra.mxu1 %v5269_v7  ;;  %4563 = vmatprep.subr.bf16.mxu0 %v5270_v8  ;;  %v5285_v23 = vld [vmem:[#allocation4 + $0xa8] sm:$0xff]   ;;  %v5286_v24 = vld [vmem:[#allocation4 + $0x70] sm:$0xff]   ;;  %v5290_v28 = vld [vmem:[#allocation4 + $0x78] sm:$0xff]  }
  0x2e   :  { %4585 = vmatprep.subr.bf16.mxu1 %v5271_v9  ;;  %v5287_v25 = vld [vmem:[#allocation4 + $0xf0] sm:$0xff]   ;;  %v5291_v29 = vld [vmem:[#allocation4 + $0xf8] sm:$0xff]   ;;  %v49_v32 = vld [vmem:[%s5915_s0] sm:$0xff] }
  0x2f   :  { %v5288_v26 = vld [vmem:[#allocation4 + $0x30] sm:$0xff]   ;;  %v5292_v30 = vld [vmem:[#allocation4 + $0x38] sm:$0xff]   ;;  %v50_v33 = vld [vmem:[%s5915_s0 + $0x8] sm:$0xff]  ;;  %v5740_v34 = vcombine.high %v49_v32, %v49_v32  ;;  %v5744_v36 = vcombine.low %v49_v32, %v49_v32 }
  0x30   :  { %4564 = vmatpush3.bf16.msra.mxu0 %v5272_v10  ;;  %v5289_v27 = vld [vmem:[#allocation4 + $0xb0] sm:$0xff]   ;;  %v5293_v31 = vld [vmem:[#allocation4 + $0xb8] sm:$0xff]   ;;  %v5742_v35 = vcombine.high %v50_v33, %v50_v33  ;;  %v5746_v37 = vcombine.low %v50_v33, %v50_v33  ;;  %v5298_v38 = vld [vmem:[#allocation4 + $0x140] sm:$0xff]  }
  0x31   :  { %4586 = vmatpush3.bf16.msra.mxu1 %v5273_v11  ;;  %4565 = vmatprep.subr.bf16.mxu0 %v5274_v12  ;;  %v5299_v39 = vld [vmem:[#allocation4 + $0x1c0] sm:$0xff]   ;;  %v5302_v42 = vld [vmem:[#allocation4 + $0x148] sm:$0xff]   ;;  %v5306_v46 = vld [vmem:[#allocation4 + $0x150] sm:$0xff]  }
  0x32   :  { %4587 = vmatprep.subr.bf16.mxu1 %v5275_v13  ;;  %353 = vmatprep.mubr.bf16.mxu0 %v5740_v34  ;;  %v5300_v40 = vld [vmem:[#allocation4 + $0x100] sm:$0xff]   ;;  %v5303_v43 = vld [vmem:[#allocation4 + $0x1c8] sm:$0xff]   ;;  %v5307_v47 = vld [vmem:[#allocation4 + $0x1d0] sm:$0xff]  }
  0x33   :  { %393 = vmatprep.mubr.bf16.mxu1 %v5742_v35  ;;  %v5301_v41 = vld [vmem:[#allocation4 + $0x180] sm:$0xff]   ;;  %v5304_v44 = vld [vmem:[#allocation4 + $0x108] sm:$0xff]   ;;  %v5308_v48 = vld [vmem:[#allocation4 + $0x110] sm:$0xff]  }
  0x34   :  { %4566 = vmatpush3.bf16.msra.mxu0 %v5276_v14  ;;  %v5305_v45 = vld [vmem:[#allocation4 + $0x188] sm:$0xff]   ;;  %v5309_v49 = vld [vmem:[#allocation4 + $0x190] sm:$0xff]   ;;  %v5310_v50 = vld [vmem:[#allocation4 + $0x158] sm:$0xff]  }
  0x35   :  { %4588 = vmatpush3.bf16.msra.mxu1 %v5277_v15  ;;  %4567 = vmatprep.subr.bf16.mxu0 %v5278_v16  ;;  %v5311_v51 = vld [vmem:[#allocation4 + $0x1d8] sm:$0xff]   ;;  %v5314_v54 = vld [vmem:[#allocation4 + $0x160] sm:$0xff]   ;;  %v5318_v58 = vld [vmem:[#allocation4 + $0x168] sm:$0xff]  }
  0x36   :  { %4589 = vmatprep.subr.bf16.mxu1 %v5279_v17  ;;  %v5312_v52 = vld [vmem:[#allocation4 + $0x118] sm:$0xff]   ;;  %v5315_v55 = vld [vmem:[#allocation4 + $0x1e0] sm:$0xff]   ;;  %v5319_v59 = vld [vmem:[#allocation4 + $0x1e8] sm:$0xff]  }
  0x37   :  { %v5313_v53 = vld [vmem:[#allocation4 + $0x198] sm:$0xff]   ;;  %v5316_v56 = vld [vmem:[#allocation4 + $0x120] sm:$0xff]   ;;  %v5320_v60 = vld [vmem:[#allocation4 + $0x128] sm:$0xff]  }
  0x38   :  { %4568 = vmatpush3.bf16.msra.mxu0 %v5280_v18  ;;  %v5317_v57 = vld [vmem:[#allocation4 + $0x1a0] sm:$0xff]   ;;  %v5321_v61 = vld [vmem:[#allocation4 + $0x1a8] sm:$0xff]   ;;  %v5322_v62 = vld [vmem:[#allocation4 + $0x170] sm:$0xff]  }
  0x39   :  { %4590 = vmatpush3.bf16.msra.mxu1 %v5281_v19  ;;  %4569 = vmatprep.subr.bf16.mxu0 %v5282_v20  ;;  %v5323_v63 = vld [vmem:[#allocation4 + $0x1f0] sm:$0xff]   ;;  %v5326_v2 = vld [vmem:[#allocation4 + $0x178] sm:$0xff]   ;;  %v5330_v6 = vld [vmem:[#allocation4 + $0x240] sm:$0xff]  }
  0x3a   :  { %4591 = vmatprep.subr.bf16.mxu1 %v5283_v21  ;;  %v5324_v0 = vld [vmem:[#allocation4 + $0x130] sm:$0xff]   ;;  %v5327_v3 = vld [vmem:[#allocation4 + $0x1f8] sm:$0xff]   ;;  %v5331_v7 = vld [vmem:[#allocation4 + $0x2c0] sm:$0xff]  }
  0x3b   :  { %v5325_v1 = vld [vmem:[#allocation4 + $0x1b0] sm:$0xff]   ;;  %v5328_v4 = vld [vmem:[#allocation4 + $0x138] sm:$0xff]   ;;  %v5332_v8 = vld [vmem:[#allocation4 + $0x200] sm:$0xff]  }
  0x3c   :  { %4570 = vmatpush3.bf16.msra.mxu0 %v5284_v22  ;;  %v5329_v5 = vld [vmem:[#allocation4 + $0x1b8] sm:$0xff]   ;;  %v5333_v9 = vld [vmem:[#allocation4 + $0x280] sm:$0xff]   ;;  %v5334_v10 = vld [vmem:[#allocation4 + $0x248] sm:$0xff]  }
  0x3d   :  { %4592 = vmatpush3.bf16.msra.mxu1 %v5285_v23  ;;  %4571 = vmatprep.subr.bf16.mxu0 %v5286_v24  ;;  %v5335_v11 = vld [vmem:[#allocation4 + $0x2c8] sm:$0xff]   ;;  %v5338_v14 = vld [vmem:[#allocation4 + $0x250] sm:$0xff]   ;;  %v5342_v18 = vld [vmem:[#allocation4 + $0x258] sm:$0xff]  }
  0x3e   :  { %4593 = vmatprep.subr.bf16.mxu1 %v5287_v25  ;;  %v5336_v12 = vld [vmem:[#allocation4 + $0x208] sm:$0xff]   ;;  %v5339_v15 = vld [vmem:[#allocation4 + $0x2d0] sm:$0xff]   ;;  %v5343_v19 = vld [vmem:[#allocation4 + $0x2d8] sm:$0xff]  }
  0x3f   :  { %v5337_v13 = vld [vmem:[#allocation4 + $0x288] sm:$0xff]   ;;  %v5340_v16 = vld [vmem:[#allocation4 + $0x210] sm:$0xff]   ;;  %v5344_v20 = vld [vmem:[#allocation4 + $0x218] sm:$0xff]  }
  0x40   :  { %4572 = vmatpush3.bf16.msra.mxu0 %v5288_v26  ;;  %v5341_v17 = vld [vmem:[#allocation4 + $0x290] sm:$0xff]   ;;  %v5345_v21 = vld [vmem:[#allocation4 + $0x298] sm:$0xff]   ;;  %v5346_v22 = vld [vmem:[#allocation4 + $0x260] sm:$0xff]  }
  0x41   :  { %4594 = vmatpush3.bf16.msra.mxu1 %v5289_v27  ;;  %4573 = vmatprep.subr.bf16.mxu0 %v5290_v28  ;;  %v5347_v23 = vld [vmem:[#allocation4 + $0x2e0] sm:$0xff]   ;;  %v5350_v26 = vld [vmem:[#allocation4 + $0x268] sm:$0xff]   ;;  %v5356_v32 = vld [vmem:[#allocation4 + $0x230] sm:$0xff]  }
  0x42   :  { %4595 = vmatprep.subr.bf16.mxu1 %v5291_v29  ;;  %v5348_v24 = vld [vmem:[#allocation4 + $0x220] sm:$0xff]   ;;  %v5351_v27 = vld [vmem:[#allocation4 + $0x2e8] sm:$0xff]   ;;  %v5357_v33 = vld [vmem:[#allocation4 + $0x2b0] sm:$0xff]  }
  0x43   :  { %v5349_v25 = vld [vmem:[#allocation4 + $0x2a0] sm:$0xff]   ;;  %v5352_v28 = vld [vmem:[#allocation4 + $0x228] sm:$0xff]  }
  0x44   :  { %4574 = vmatpush3.bf16.msra.mxu0 %v5292_v30  ;;  %v5353_v29 = vld [vmem:[#allocation4 + $0x2a8] sm:$0xff]   ;;  %v5354_v30 = vld [vmem:[#allocation4 + $0x270] sm:$0xff]  }
  0x45   :  { %4596 = vmatpush3.bf16.msra.mxu1 %v5293_v31  ;;  %4603 = vmatprep.subr.bf16.mxu0 %v5298_v38  ;;  %v5355_v31 = vld [vmem:[#allocation4 + $0x2f0] sm:$0xff]   ;;  %v5358_v38 = vld [vmem:[#allocation4 + $0x278] sm:$0xff]  }
  0x46   :  { %4625 = vmatprep.subr.bf16.mxu1 %v5299_v39  ;;  %v5359_v39 = vld [vmem:[#allocation4 + $0x2f8] sm:$0xff]  }
  0x47   :  { %354 = vmatmul.mubr.bf16.vlgmr.msra.gmra.mrb[0].mxu0 %v5744_v36 }
  0x48   :  { %394 = vmatmul.mubr.bf16.vlgmr.msra.gmra.mrb[0].mxu1 %v5746_v37  ;;  %4604 = vmatpush3.bf16.msra.mxu0 %v5300_v40  ;;  %v5360_v40 = vld [vmem:[#allocation4 + $0x238] sm:$0xff]  }
  0x49   :  { %4626 = vmatpush3.bf16.msra.mxu1 %v5301_v41  ;;  %4605 = vmatprep.subr.bf16.mxu0 %v5302_v42  ;;  %v5361_v41 = vld [vmem:[#allocation4 + $0x2b8] sm:$0xff]   ;;  %v5362_v42 = vld [vmem:[#allocation4 + $0x340] sm:$0xff]  }
  0x4a   :  { %691 = vmatprep.mubr.bf16.mxu0 %v5740_v34  ;;  %4627 = vmatprep.subr.bf16.mxu1 %v5303_v43  ;;  %v5363_v43 = vld [vmem:[#allocation4 + $0x3c0] sm:$0xff]  }
  0x4b   :  { %731 = vmatprep.mubr.bf16.mxu1 %v5742_v35 }
  0x4c   :  { %4606 = vmatpush3.bf16.msra.mxu0 %v5304_v44  ;;  %v5364_v44 = vld [vmem:[#allocation4 + $0x300] sm:$0xff]  }
  0x4d   :  { %4628 = vmatpush3.bf16.msra.mxu1 %v5305_v45  ;;  %4607 = vmatprep.subr.bf16.mxu0 %v5306_v46  ;;  %v5365_v45 = vld [vmem:[#allocation4 + $0x380] sm:$0xff]   ;;  %v5366_v46 = vld [vmem:[#allocation4 + $0x348] sm:$0xff]  }
  0x4e   :  { %4629 = vmatprep.subr.bf16.mxu1 %v5307_v47  ;;  %v5367_v47 = vld [vmem:[#allocation4 + $0x3c8] sm:$0xff]  }
  0x50   :  { %4608 = vmatpush3.bf16.msra.mxu0 %v5308_v48  ;;  %v5368_v48 = vld [vmem:[#allocation4 + $0x308] sm:$0xff]  }
  0x51   :  { %4630 = vmatpush3.bf16.msra.mxu1 %v5309_v49  ;;  %4609 = vmatprep.subr.bf16.mxu0 %v5310_v50  ;;  %v5369_v49 = vld [vmem:[#allocation4 + $0x388] sm:$0xff]   ;;  %v5370_v50 = vld [vmem:[#allocation4 + $0x350] sm:$0xff]  }
  0x52   :  { %4631 = vmatprep.subr.bf16.mxu1 %v5311_v51  ;;  %v5371_v51 = vld [vmem:[#allocation4 + $0x3d0] sm:$0xff]  }
  0x54   :  { %4610 = vmatpush3.bf16.msra.mxu0 %v5312_v52  ;;  %v5372_v52 = vld [vmem:[#allocation4 + $0x310] sm:$0xff]  }
  0x55   :  { %4632 = vmatpush3.bf16.msra.mxu1 %v5313_v53  ;;  %4611 = vmatprep.subr.bf16.mxu0 %v5314_v54  ;;  %v5373_v53 = vld [vmem:[#allocation4 + $0x390] sm:$0xff]   ;;  %v5374_v54 = vld [vmem:[#allocation4 + $0x358] sm:$0xff]  }
  0x56   :  { %4633 = vmatprep.subr.bf16.mxu1 %v5315_v55  ;;  %v5375_v55 = vld [vmem:[#allocation4 + $0x3d8] sm:$0xff]  }
  0x58   :  { %4612 = vmatpush3.bf16.msra.mxu0 %v5316_v56  ;;  %v5376_v56 = vld [vmem:[#allocation4 + $0x318] sm:$0xff]  }
  0x59   :  { %4634 = vmatpush3.bf16.msra.mxu1 %v5317_v57  ;;  %4613 = vmatprep.subr.bf16.mxu0 %v5318_v58  ;;  %v5377_v57 = vld [vmem:[#allocation4 + $0x398] sm:$0xff]   ;;  %v5378_v58 = vld [vmem:[#allocation4 + $0x360] sm:$0xff]  }
  0x5a   :  { %4635 = vmatprep.subr.bf16.mxu1 %v5319_v59  ;;  %v5379_v59 = vld [vmem:[#allocation4 + $0x3e0] sm:$0xff]  }
  0x5c   :  { %4614 = vmatpush3.bf16.msra.mxu0 %v5320_v60  ;;  %v5380_v60 = vld [vmem:[#allocation4 + $0x320] sm:$0xff]  }
  0x5d   :  { %4636 = vmatpush3.bf16.msra.mxu1 %v5321_v61  ;;  %4615 = vmatprep.subr.bf16.mxu0 %v5322_v62  ;;  %v5381_v61 = vld [vmem:[#allocation4 + $0x3a0] sm:$0xff]   ;;  %v5382_v62 = vld [vmem:[#allocation4 + $0x368] sm:$0xff]  }
  0x5e   :  { %4637 = vmatprep.subr.bf16.mxu1 %v5323_v63  ;;  %v5383_v63 = vld [vmem:[#allocation4 + $0x3e8] sm:$0xff]  }
  0x60   :  { %4616 = vmatpush3.bf16.msra.mxu0 %v5324_v0  ;;  %v5384_v0 = vld [vmem:[#allocation4 + $0x328] sm:$0xff]  }
  0x61   :  { %4638 = vmatpush3.bf16.msra.mxu1 %v5325_v1  ;;  %4617 = vmatprep.subr.bf16.mxu0 %v5326_v2  ;;  %v5385_v1 = vld [vmem:[#allocation4 + $0x3a8] sm:$0xff]   ;;  %v5386_v2 = vld [vmem:[#allocation4 + $0x370] sm:$0xff]  }
  0x62   :  { %4639 = vmatprep.subr.bf16.mxu1 %v5327_v3  ;;  %v5387_v3 = vld [vmem:[#allocation4 + $0x3f0] sm:$0xff]  }
  0x64   :  { %4618 = vmatpush3.bf16.msra.mxu0 %v5328_v4  ;;  %v5388_v4 = vld [vmem:[#allocation4 + $0x330] sm:$0xff]  }
  0x65   :  { %4640 = vmatpush3.bf16.msra.mxu1 %v5329_v5  ;;  %4647 = vmatprep.subr.bf16.mxu0 %v5330_v6  ;;  %v5389_v5 = vld [vmem:[#allocation4 + $0x3b0] sm:$0xff]   ;;  %v5390_v6 = vld [vmem:[#allocation4 + $0x378] sm:$0xff]  }
  0x66   :  { %4669 = vmatprep.subr.bf16.mxu1 %v5331_v7  ;;  %v5391_v7 = vld [vmem:[#allocation4 + $0x3f8] sm:$0xff]  }
  0x67   :  { %692 = vmatmul.mubr.bf16.vlgmr.msra.gmra.mrb[4].mxu0 %v5744_v36 }
  0x68   :  { %732 = vmatmul.mubr.bf16.vlgmr.msra.gmra.mrb[4].mxu1 %v5746_v37  ;;  %4648 = vmatpush3.bf16.msra.mxu0 %v5332_v8  ;;  %v5392_v8 = vld [vmem:[#allocation4 + $0x338] sm:$0xff]  }
  0x69   :  { %4670 = vmatpush3.bf16.msra.mxu1 %v5333_v9  ;;  %4649 = vmatprep.subr.bf16.mxu0 %v5334_v10  ;;  %v5393_v9 = vld [vmem:[#allocation4 + $0x3b8] sm:$0xff]   ;;  %v5394_v10 = vld [vmem:[#allocation4 + $0x440] sm:$0xff]  }
  0x6a   :  { %1029 = vmatprep.mubr.bf16.mxu0 %v5740_v34  ;;  %4671 = vmatprep.subr.bf16.mxu1 %v5335_v11  ;;  %v5395_v11 = vld [vmem:[#allocation4 + $0x4c0] sm:$0xff]  }
  0x6b   :  { %1069 = vmatprep.mubr.bf16.mxu1 %v5742_v35 }
  0x6c   :  { %4650 = vmatpush3.bf16.msra.mxu0 %v5336_v12  ;;  %v5396_v12 = vld [vmem:[#allocation4 + $0x400] sm:$0xff]  }
  0x6d   :  { %4672 = vmatpush3.bf16.msra.mxu1 %v5337_v13  ;;  %4651 = vmatprep.subr.bf16.mxu0 %v5338_v14  ;;  %v5397_v13 = vld [vmem:[#allocation4 + $0x480] sm:$0xff]   ;;  %v5398_v14 = vld [vmem:[#allocation4 + $0x448] sm:$0xff]  }
  0x6e   :  { %4673 = vmatprep.subr.bf16.mxu1 %v5339_v15  ;;  %v5399_v15 = vld [vmem:[#allocation4 + $0x4c8] sm:$0xff]  }
  0x70   :  { %4652 = vmatpush3.bf16.msra.mxu0 %v5340_v16  ;;  %v5400_v16 = vld [vmem:[#allocation4 + $0x408] sm:$0xff]  }
  0x71   :  { %4674 = vmatpush3.bf16.msra.mxu1 %v5341_v17  ;;  %4653 = vmatprep.subr.bf16.mxu0 %v5342_v18  ;;  %v5401_v17 = vld [vmem:[#allocation4 + $0x488] sm:$0xff]   ;;  %v5402_v18 = vld [vmem:[#allocation4 + $0x450] sm:$0xff]  }
  0x72   :  { %4675 = vmatprep.subr.bf16.mxu1 %v5343_v19  ;;  %v5403_v19 = vld [vmem:[#allocation4 + $0x4d0] sm:$0xff]  }
  0x74   :  { %4654 = vmatpush3.bf16.msra.mxu0 %v5344_v20  ;;  %v5404_v20 = vld [vmem:[#allocation4 + $0x410] sm:$0xff]  }
  0x75   :  { %4676 = vmatpush3.bf16.msra.mxu1 %v5345_v21  ;;  %4655 = vmatprep.subr.bf16.mxu0 %v5346_v22  ;;  %v5405_v21 = vld [vmem:[#allocation4 + $0x490] sm:$0xff]   ;;  %v5406_v22 = vld [vmem:[#allocation4 + $0x458] sm:$0xff]  }
  0x76   :  { %4677 = vmatprep.subr.bf16.mxu1 %v5347_v23  ;;  %v5407_v23 = vld [vmem:[#allocation4 + $0x4d8] sm:$0xff]  }
  0x78   :  { %4656 = vmatpush3.bf16.msra.mxu0 %v5348_v24  ;;  %v5408_v24 = vld [vmem:[#allocation4 + $0x418] sm:$0xff]  }
  0x79   :  { %4678 = vmatpush3.bf16.msra.mxu1 %v5349_v25  ;;  %4657 = vmatprep.subr.bf16.mxu0 %v5350_v26  ;;  %v5409_v25 = vld [vmem:[#allocation4 + $0x498] sm:$0xff]   ;;  %v5410_v26 = vld [vmem:[#allocation4 + $0x460] sm:$0xff]  }
  0x7a   :  { %4679 = vmatprep.subr.bf16.mxu1 %v5351_v27  ;;  %v5411_v27 = vld [vmem:[#allocation4 + $0x4e0] sm:$0xff]  }
  0x7c   :  { %4658 = vmatpush3.bf16.msra.mxu0 %v5352_v28  ;;  %v5412_v28 = vld [vmem:[#allocation4 + $0x420] sm:$0xff]  }
  0x7d   :  { %4680 = vmatpush3.bf16.msra.mxu1 %v5353_v29  ;;  %4659 = vmatprep.subr.bf16.mxu0 %v5354_v30  ;;  %v5413_v29 = vld [vmem:[#allocation4 + $0x4a0] sm:$0xff]   ;;  %v5414_v30 = vld [vmem:[#allocation4 + $0x468] sm:$0xff]  }
  0x7e   :  { %4681 = vmatprep.subr.bf16.mxu1 %v5355_v31  ;;  %v5415_v31 = vld [vmem:[#allocation4 + $0x4e8] sm:$0xff]  }
  0x80   :  { %4660 = vmatpush3.bf16.msra.mxu0 %v5356_v32  ;;  %v5416_v32 = vld [vmem:[#allocation4 + $0x428] sm:$0xff]  }
  0x81   :  { %4682 = vmatpush3.bf16.msra.mxu1 %v5357_v33  ;;  %4661 = vmatprep.subr.bf16.mxu0 %v5358_v38  ;;  %v5417_v33 = vld [vmem:[#allocation4 + $0x4a8] sm:$0xff]   ;;  %v5418_v38 = vld [vmem:[#allocation4 + $0x470] sm:$0xff]  }
  0x82   :  { %4683 = vmatprep.subr.bf16.mxu1 %v5359_v39  ;;  %v5419_v39 = vld [vmem:[#allocation4 + $0x4f0] sm:$0xff]  }
  0x84   :  { %4662 = vmatpush3.bf16.msra.mxu0 %v5360_v40  ;;  %v5420_v40 = vld [vmem:[#allocation4 + $0x430] sm:$0xff]  }
  0x85   :  { %4684 = vmatpush3.bf16.msra.mxu1 %v5361_v41  ;;  %4691 = vmatprep.subr.bf16.mxu0 %v5362_v42  ;;  %v5421_v41 = vld [vmem:[#allocation4 + $0x4b0] sm:$0xff]   ;;  %v5422_v42 = vld [vmem:[#allocation4 + $0x478] sm:$0xff]  }
  0x86   :  { %4713 = vmatprep.subr.bf16.mxu1 %v5363_v43  ;;  %v5423_v43 = vld [vmem:[#allocation4 + $0x4f8] sm:$0xff]  }
  0x87   :  { %1030 = vmatmul.mubr.bf16.vlgmr.msra.gmra.mrb[8].mxu0 %v5744_v36 }
  0x88   :  { %1070 = vmatmul.mubr.bf16.vlgmr.msra.gmra.mrb[8].mxu1 %v5746_v37  ;;  %4692 = vmatpush3.bf16.msra.mxu0 %v5364_v44  ;;  %v5424_v44 = vld [vmem:[#allocation4 + $0x438] sm:$0xff]  }
  0x89   :  { %4714 = vmatpush3.bf16.msra.mxu1 %v5365_v45  ;;  %4693 = vmatprep.subr.bf16.mxu0 %v5366_v46  ;;  %v5425_v45 = vld [vmem:[#allocation4 + $0x4b8] sm:$0xff]   ;;  %v5426_v46 = vld [vmem:[#allocation4 + $0x540] sm:$0xff]  }
  0x8a   :  { %1367 = vmatprep.mubr.bf16.mxu0 %v5740_v34  ;;  %4715 = vmatprep.subr.bf16.mxu1 %v5367_v47  ;;  %v5427_v47 = vld [vmem:[#allocation4 + $0x5c0] sm:$0xff]  }
  0x8b   :  { %1407 = vmatprep.mubr.bf16.mxu1 %v5742_v35 }
  0x8c   :  { %4694 = vmatpush3.bf16.msra.mxu0 %v5368_v48  ;;  %v5428_v48 = vld [vmem:[#allocation4 + $0x500] sm:$0xff]  }
  0x8d   :  { %4716 = vmatpush3.bf16.msra.mxu1 %v5369_v49  ;;  %4695 = vmatprep.subr.bf16.mxu0 %v5370_v50  ;;  %v5429_v49 = vld [vmem:[#allocation4 + $0x580] sm:$0xff]   ;;  %v5430_v50 = vld [vmem:[#allocation4 + $0x548] sm:$0xff]  }
  0x8e   :  { %4717 = vmatprep.subr.bf16.mxu1 %v5371_v51  ;;  %v5431_v51 = vld [vmem:[#allocation4 + $0x5c8] sm:$0xff]  }
  0x90   :  { %4696 = vmatpush3.bf16.msra.mxu0 %v5372_v52  ;;  %v5432_v52 = vld [vmem:[#allocation4 + $0x508] sm:$0xff]  }
  0x91   :  { %4718 = vmatpush3.bf16.msra.mxu1 %v5373_v53  ;;  %4697 = vmatprep.subr.bf16.mxu0 %v5374_v54  ;;  %v5433_v53 = vld [vmem:[#allocation4 + $0x588] sm:$0xff]   ;;  %v5434_v54 = vld [vmem:[#allocation4 + $0x550] sm:$0xff]  }
  0x92   :  { %4719 = vmatprep.subr.bf16.mxu1 %v5375_v55  ;;  %v5435_v55 = vld [vmem:[#allocation4 + $0x5d0] sm:$0xff]  }
  0x94   :  { %4698 = vmatpush3.bf16.msra.mxu0 %v5376_v56  ;;  %v5436_v56 = vld [vmem:[#allocation4 + $0x510] sm:$0xff]  }
  0x95   :  { %4720 = vmatpush3.bf16.msra.mxu1 %v5377_v57  ;;  %4699 = vmatprep.subr.bf16.mxu0 %v5378_v58  ;;  %v5437_v57 = vld [vmem:[#allocation4 + $0x590] sm:$0xff]   ;;  %v5438_v58 = vld [vmem:[#allocation4 + $0x558] sm:$0xff]  }
  0x96   :  { %4721 = vmatprep.subr.bf16.mxu1 %v5379_v59  ;;  %v5439_v59 = vld [vmem:[#allocation4 + $0x5d8] sm:$0xff]  }
  0x98   :  { %4700 = vmatpush3.bf16.msra.mxu0 %v5380_v60  ;;  %v5440_v60 = vld [vmem:[#allocation4 + $0x518] sm:$0xff]  }
  0x99   :  { %4722 = vmatpush3.bf16.msra.mxu1 %v5381_v61  ;;  %4701 = vmatprep.subr.bf16.mxu0 %v5382_v62  ;;  %v5441_v61 = vld [vmem:[#allocation4 + $0x598] sm:$0xff]   ;;  %v5442_v62 = vld [vmem:[#allocation4 + $0x560] sm:$0xff]  }
  0x9a   :  { %4723 = vmatprep.subr.bf16.mxu1 %v5383_v63  ;;  %v5443_v63 = vld [vmem:[#allocation4 + $0x5e0] sm:$0xff]  }
  0x9c   :  { %4702 = vmatpush3.bf16.msra.mxu0 %v5384_v0  ;;  %v5444_v0 = vld [vmem:[#allocation4 + $0x520] sm:$0xff]  }
  0x9d   :  { %4724 = vmatpush3.bf16.msra.mxu1 %v5385_v1  ;;  %4703 = vmatprep.subr.bf16.mxu0 %v5386_v2  ;;  %v5445_v1 = vld [vmem:[#allocation4 + $0x5a0] sm:$0xff]   ;;  %v5446_v2 = vld [vmem:[#allocation4 + $0x568] sm:$0xff]  }
  0x9e   :  { %4725 = vmatprep.subr.bf16.mxu1 %v5387_v3  ;;  %v5447_v3 = vld [vmem:[#allocation4 + $0x5e8] sm:$0xff]  }
  0xa0   :  { %4704 = vmatpush3.bf16.msra.mxu0 %v5388_v4  ;;  %v5448_v4 = vld [vmem:[#allocation4 + $0x528] sm:$0xff]  }
  0xa1   :  { %4726 = vmatpush3.bf16.msra.mxu1 %v5389_v5  ;;  %4705 = vmatprep.subr.bf16.mxu0 %v5390_v6  ;;  %v5449_v5 = vld [vmem:[#allocation4 + $0x5a8] sm:$0xff]   ;;  %v5450_v6 = vld [vmem:[#allocation4 + $0x570] sm:$0xff]  }
  0xa2   :  { %4727 = vmatprep.subr.bf16.mxu1 %v5391_v7  ;;  %v5451_v7 = vld [vmem:[#allocation4 + $0x5f0] sm:$0xff]  }
  0xa4   :  { %4706 = vmatpush3.bf16.msra.mxu0 %v5392_v8  ;;  %v5452_v8 = vld [vmem:[#allocation4 + $0x530] sm:$0xff]  }
  0xa5   :  { %4728 = vmatpush3.bf16.msra.mxu1 %v5393_v9  ;;  %4735 = vmatprep.subr.bf16.mxu0 %v5394_v10  ;;  %v5453_v9 = vld [vmem:[#allocation4 + $0x5b0] sm:$0xff]   ;;  %v5454_v10 = vld [vmem:[#allocation4 + $0x578] sm:$0xff]  }
  0xa6   :  { %4757 = vmatprep.subr.bf16.mxu1 %v5395_v11  ;;  %v5455_v11 = vld [vmem:[#allocation4 + $0x5f8] sm:$0xff]  }
  0xa7   :  { %1368 = vmatmul.mubr.bf16.vlgmr.msra.gmra.mrb[12].mxu0 %v5744_v36 }
  0xa8   :  { %1408 = vmatmul.mubr.bf16.vlgmr.msra.gmra.mrb[12].mxu1 %v5746_v37  ;;  %4736 = vmatpush3.bf16.msra.mxu0 %v5396_v12  ;;  %v5456_v12 = vld [vmem:[#allocation4 + $0x538] sm:$0xff]  }
  0xa9   :  { %4758 = vmatpush3.bf16.msra.mxu1 %v5397_v13  ;;  %4737 = vmatprep.subr.bf16.mxu0 %v5398_v14  ;;  %v5457_v13 = vld [vmem:[#allocation4 + $0x5b8] sm:$0xff]   ;;  %v5458_v14 = vld [vmem:[#allocation4 + $0x640] sm:$0xff]  }
  0xaa   :  { %1705 = vmatprep.mubr.bf16.mxu0 %v5740_v34  ;;  %4759 = vmatprep.subr.bf16.mxu1 %v5399_v15  ;;  %v5459_v15 = vld [vmem:[#allocation4 + $0x6c0] sm:$0xff]  }
  0xab   :  { %1745 = vmatprep.mubr.bf16.mxu1 %v5742_v35 }
  0xac   :  { %4738 = vmatpush3.bf16.msra.mxu0 %v5400_v16  ;;  %v5460_v16 = vld [vmem:[#allocation4 + $0x600] sm:$0xff]  }
  0xad   :  { %4760 = vmatpush3.bf16.msra.mxu1 %v5401_v17  ;;  %4739 = vmatprep.subr.bf16.mxu0 %v5402_v18  ;;  %v5461_v17 = vld [vmem:[#allocation4 + $0x680] sm:$0xff]   ;;  %v5462_v18 = vld [vmem:[#allocation4 + $0x648] sm:$0xff]  }
  0xae   :  { %4761 = vmatprep.subr.bf16.mxu1 %v5403_v19  ;;  %v5463_v19 = vld [vmem:[#allocation4 + $0x6c8] sm:$0xff]  }
  0xb0   :  { %4740 = vmatpush3.bf16.msra.mxu0 %v5404_v20  ;;  %v5464_v20 = vld [vmem:[#allocation4 + $0x608] sm:$0xff]  }
  0xb1   :  { %4762 = vmatpush3.bf16.msra.mxu1 %v5405_v21  ;;  %4741 = vmatprep.subr.bf16.mxu0 %v5406_v22  ;;  %v5465_v21 = vld [vmem:[#allocation4 + $0x688] sm:$0xff]   ;;  %v5466_v22 = vld [vmem:[#allocation4 + $0x650] sm:$0xff]  }
  0xb2   :  { %4763 = vmatprep.subr.bf16.mxu1 %v5407_v23  ;;  %v5467_v23 = vld [vmem:[#allocation4 + $0x6d0] sm:$0xff]  }
  0xb4   :  { %4742 = vmatpush3.bf16.msra.mxu0 %v5408_v24  ;;  %v5468_v24 = vld [vmem:[#allocation4 + $0x610] sm:$0xff]  }
  0xb5   :  { %4764 = vmatpush3.bf16.msra.mxu1 %v5409_v25  ;;  %4743 = vmatprep.subr.bf16.mxu0 %v5410_v26  ;;  %v5469_v25 = vld [vmem:[#allocation4 + $0x690] sm:$0xff]   ;;  %v5470_v26 = vld [vmem:[#allocation4 + $0x658] sm:$0xff]  }
  0xb6   :  { %4765 = vmatprep.subr.bf16.mxu1 %v5411_v27  ;;  %v5471_v27 = vld [vmem:[#allocation4 + $0x6d8] sm:$0xff]  }
  0xb8   :  { %4744 = vmatpush3.bf16.msra.mxu0 %v5412_v28  ;;  %v5472_v28 = vld [vmem:[#allocation4 + $0x618] sm:$0xff]  }
  0xb9   :  { %4766 = vmatpush3.bf16.msra.mxu1 %v5413_v29  ;;  %4745 = vmatprep.subr.bf16.mxu0 %v5414_v30  ;;  %v5473_v29 = vld [vmem:[#allocation4 + $0x698] sm:$0xff]   ;;  %v5474_v30 = vld [vmem:[#allocation4 + $0x660] sm:$0xff]  }
  0xba   :  { %4767 = vmatprep.subr.bf16.mxu1 %v5415_v31  ;;  %v5475_v31 = vld [vmem:[#allocation4 + $0x6e0] sm:$0xff]  }
  0xbc   :  { %4746 = vmatpush3.bf16.msra.mxu0 %v5416_v32  ;;  %v5476_v32 = vld [vmem:[#allocation4 + $0x620] sm:$0xff]  }
  0xbd   :  { %4768 = vmatpush3.bf16.msra.mxu1 %v5417_v33  ;;  %4747 = vmatprep.subr.bf16.mxu0 %v5418_v38  ;;  %v5477_v33 = vld [vmem:[#allocation4 + $0x6a0] sm:$0xff]   ;;  %v5478_v38 = vld [vmem:[#allocation4 + $0x668] sm:$0xff]  }
  0xbe   :  { %4769 = vmatprep.subr.bf16.mxu1 %v5419_v39  ;;  %v5479_v39 = vld [vmem:[#allocation4 + $0x6e8] sm:$0xff]  }
  0xc0   :  { %4748 = vmatpush3.bf16.msra.mxu0 %v5420_v40  ;;  %v5480_v40 = vld [vmem:[#allocation4 + $0x628] sm:$0xff]  }
  0xc1   :  { %4770 = vmatpush3.bf16.msra.mxu1 %v5421_v41  ;;  %4749 = vmatprep.subr.bf16.mxu0 %v5422_v42  ;;  %v5481_v41 = vld [vmem:[#allocation4 + $0x6a8] sm:$0xff]   ;;  %v5482_v42 = vld [vmem:[#allocation4 + $0x670] sm:$0xff]  }
  0xc2   :  { %4771 = vmatprep.subr.bf16.mxu1 %v5423_v43  ;;  %v5483_v43 = vld [vmem:[#allocation4 + $0x6f0] sm:$0xff]  }
  0xc4   :  { %4750 = vmatpush3.bf16.msra.mxu0 %v5424_v44  ;;  %v5484_v44 = vld [vmem:[#allocation4 + $0x630] sm:$0xff]  }
  0xc5   :  { %4772 = vmatpush3.bf16.msra.mxu1 %v5425_v45  ;;  %4779 = vmatprep.subr.bf16.mxu0 %v5426_v46  ;;  %v5485_v45 = vld [vmem:[#allocation4 + $0x6b0] sm:$0xff]   ;;  %v5486_v46 = vld [vmem:[#allocation4 + $0x678] sm:$0xff]  }
  0xc6   :  { %4801 = vmatprep.subr.bf16.mxu1 %v5427_v47  ;;  %v5487_v47 = vld [vmem:[#allocation4 + $0x6f8] sm:$0xff]  }
  0xc7   :  { %1706 = vmatmul.mubr.bf16.vlgmr.msra.gmra.mrb[16].mxu0 %v5744_v36 }
  0xc8   :  { %1746 = vmatmul.mubr.bf16.vlgmr.msra.gmra.mrb[16].mxu1 %v5746_v37  ;;  %4780 = vmatpush3.bf16.msra.mxu0 %v5428_v48  ;;  %v5488_v48 = vld [vmem:[#allocation4 + $0x638] sm:$0xff]  }
  0xc9   :  { %4802 = vmatpush3.bf16.msra.mxu1 %v5429_v49  ;;  %4781 = vmatprep.subr.bf16.mxu0 %v5430_v50  ;;  %v5489_v49 = vld [vmem:[#allocation4 + $0x6b8] sm:$0xff]   ;;  %v5490_v50 = vld [vmem:[#allocation4 + $0x740] sm:$0xff]  }
  0xca   :  { %2043 = vmatprep.mubr.bf16.mxu0 %v5740_v34  ;;  %4803 = vmatprep.subr.bf16.mxu1 %v5431_v51  ;;  %v5491_v51 = vld [vmem:[#allocation4 + $0x7c0] sm:$0xff]  }
  0xcb   :  { %2083 = vmatprep.mubr.bf16.mxu1 %v5742_v35 }
  0xcc   :  { %4782 = vmatpush3.bf16.msra.mxu0 %v5432_v52  ;;  %v5492_v52 = vld [vmem:[#allocation4 + $0x700] sm:$0xff]  }
  0xcd   :  { %4804 = vmatpush3.bf16.msra.mxu1 %v5433_v53  ;;  %4783 = vmatprep.subr.bf16.mxu0 %v5434_v54  ;;  %v5493_v53 = vld [vmem:[#allocation4 + $0x780] sm:$0xff]   ;;  %v5494_v54 = vld [vmem:[#allocation4 + $0x748] sm:$0xff]  }
  0xce   :  { %4805 = vmatprep.subr.bf16.mxu1 %v5435_v55  ;;  %v5495_v55 = vld [vmem:[#allocation4 + $0x7c8] sm:$0xff]  }
  0xd0   :  { %4784 = vmatpush3.bf16.msra.mxu0 %v5436_v56  ;;  %v5496_v56 = vld [vmem:[#allocation4 + $0x708] sm:$0xff]  }
  0xd1   :  { %4806 = vmatpush3.bf16.msra.mxu1 %v5437_v57  ;;  %4785 = vmatprep.subr.bf16.mxu0 %v5438_v58  ;;  %v5497_v57 = vld [vmem:[#allocation4 + $0x788] sm:$0xff]   ;;  %v5498_v58 = vld [vmem:[#allocation4 + $0x750] sm:$0xff]  }
  0xd2   :  { %4807 = vmatprep.subr.bf16.mxu1 %v5439_v59  ;;  %v5499_v59 = vld [vmem:[#allocation4 + $0x7d0] sm:$0xff]  }
  0xd4   :  { %4786 = vmatpush3.bf16.msra.mxu0 %v5440_v60  ;;  %v5500_v60 = vld [vmem:[#allocation4 + $0x710] sm:$0xff]  }
  0xd5   :  { %4808 = vmatpush3.bf16.msra.mxu1 %v5441_v61  ;;  %4787 = vmatprep.subr.bf16.mxu0 %v5442_v62  ;;  %v5501_v61 = vld [vmem:[#allocation4 + $0x790] sm:$0xff]   ;;  %v5502_v62 = vld [vmem:[#allocation4 + $0x758] sm:$0xff]  }
  0xd6   :  { %4809 = vmatprep.subr.bf16.mxu1 %v5443_v63  ;;  %v5503_v63 = vld [vmem:[#allocation4 + $0x7d8] sm:$0xff]  }
  0xd8   :  { %4788 = vmatpush3.bf16.msra.mxu0 %v5444_v0  ;;  %v5504_v0 = vld [vmem:[#allocation4 + $0x718] sm:$0xff]  }
  0xd9   :  { %4810 = vmatpush3.bf16.msra.mxu1 %v5445_v1  ;;  %4789 = vmatprep.subr.bf16.mxu0 %v5446_v2  ;;  %v5505_v1 = vld [vmem:[#allocation4 + $0x798] sm:$0xff]   ;;  %v5506_v2 = vld [vmem:[#allocation4 + $0x760] sm:$0xff]  }
  0xda   :  { %4811 = vmatprep.subr.bf16.mxu1 %v5447_v3  ;;  %v5507_v3 = vld [vmem:[#allocation4 + $0x7e0] sm:$0xff]  }
  0xdc   :  { %4790 = vmatpush3.bf16.msra.mxu0 %v5448_v4  ;;  %v5508_v4 = vld [vmem:[#allocation4 + $0x720] sm:$0xff]  }
  0xdd   :  { %4812 = vmatpush3.bf16.msra.mxu1 %v5449_v5  ;;  %4791 = vmatprep.subr.bf16.mxu0 %v5450_v6  ;;  %v5509_v5 = vld [vmem:[#allocation4 + $0x7a0] sm:$0xff]   ;;  %v5510_v6 = vld [vmem:[#allocation4 + $0x768] sm:$0xff]  }
  0xde   :  { %4813 = vmatprep.subr.bf16.mxu1 %v5451_v7  ;;  %v5511_v7 = vld [vmem:[#allocation4 + $0x7e8] sm:$0xff]  }
  0xe0   :  { %4792 = vmatpush3.bf16.msra.mxu0 %v5452_v8 }
  0xe1   :  { %4814 = vmatpush3.bf16.msra.mxu1 %v5453_v9  ;;  %4793 = vmatprep.subr.bf16.mxu0 %v5454_v10  ;;  %v5512_v10 = vld [vmem:[#allocation4 + $0x728] sm:$0xff]  }
  0xe2   :  { %4815 = vmatprep.subr.bf16.mxu1 %v5455_v11  ;;  %v5513_v11 = vld [vmem:[#allocation4 + $0x7a8] sm:$0xff]  }
  0xe4   :  { %4794 = vmatpush3.bf16.msra.mxu0 %v5456_v12 }
  0xe5   :  { %4816 = vmatpush3.bf16.msra.mxu1 %v5457_v13  ;;  %4823 = vmatprep.subr.bf16.mxu0 %v5458_v14 }
  0xe6   :  { %4845 = vmatprep.subr.bf16.mxu1 %v5459_v15 }
  0xe7   :  { %2044 = vmatmul.mubr.bf16.vlgmr.msra.gmra.mrb[20].mxu0 %v5744_v36 }
  0xe8   :  { %2084 = vmatmul.mubr.bf16.vlgmr.msra.gmra.mrb[20].mxu1 %v5746_v37  ;;  %4824 = vmatpush3.bf16.msra.mxu0 %v5460_v16 }
  0xe9   :  { %4846 = vmatpush3.bf16.msra.mxu1 %v5461_v17  ;;  %4825 = vmatprep.subr.bf16.mxu0 %v5462_v18 }
  0xea   :  { %2381 = vmatprep.mubr.bf16.mxu0 %v5740_v34  ;;  %4847 = vmatprep.subr.bf16.mxu1 %v5463_v19 }
  0xeb   :  { %2421 = vmatprep.mubr.bf16.mxu1 %v5742_v35 }
  0xec   :  { %4826 = vmatpush3.bf16.msra.mxu0 %v5464_v20  ;;  %v5514_v20 = vld [vmem:[#allocation4 + $0x770] sm:$0xff]  }
  0xed   :  { %4848 = vmatpush3.bf16.msra.mxu1 %v5465_v21  ;;  %4827 = vmatprep.subr.bf16.mxu0 %v5466_v22  ;;  %v5515_v21 = vld [vmem:[#allocation4 + $0x7f0] sm:$0xff]  }
  0xee   :  { %4849 = vmatprep.subr.bf16.mxu1 %v5467_v23  ;;  %v5516_v23 = vld [vmem:[#allocation4 + $0x730] sm:$0xff]  }
  0xf0   :  { %4828 = vmatpush3.bf16.msra.mxu0 %v5468_v24  ;;  %v5517_v24 = vld [vmem:[#allocation4 + $0x7b0] sm:$0xff]  }
  0xf1   :  { %4850 = vmatpush3.bf16.msra.mxu1 %v5469_v25  ;;  %4829 = vmatprep.subr.bf16.mxu0 %v5470_v26  ;;  %v5518_v25 = vld [vmem:[#allocation4 + $0x778] sm:$0xff]  }
  0xf2   :  { %4851 = vmatprep.subr.bf16.mxu1 %v5471_v27  ;;  %v5519_v26 = vld [vmem:[#allocation4 + $0x7f8] sm:$0xff]  }
  0xf3   :  { %v5520_v27 = vld [vmem:[#allocation4 + $0x738] sm:$0xff]  }
  0xf4   :  { %4830 = vmatpush3.bf16.msra.mxu0 %v5472_v28  ;;  %v5521_v28 = vld [vmem:[#allocation4 + $0x7b8] sm:$0xff]  }
  0xf5   :  { %4852 = vmatpush3.bf16.msra.mxu1 %v5473_v29  ;;  %4831 = vmatprep.subr.bf16.mxu0 %v5474_v30  ;;  %v5522_v29 = vld [vmem:[#allocation4 + $0x840] sm:$0xff]  }
  0xf6   :  { %4853 = vmatprep.subr.bf16.mxu1 %v5475_v31  ;;  %v5523_v30 = vld [vmem:[#allocation4 + $0x8c0] sm:$0xff]  }
  0xf7   :  { %v5524_v31 = vld [vmem:[#allocation4 + $0x800] sm:$0xff]  }
  0xf8   :  { %4832 = vmatpush3.bf16.msra.mxu0 %v5476_v32  ;;  %v5525_v32 = vld [vmem:[#allocation4 + $0x880] sm:$0xff]  }
  0xf9   :  { %4854 = vmatpush3.bf16.msra.mxu1 %v5477_v33  ;;  %4833 = vmatprep.subr.bf16.mxu0 %v5478_v38  ;;  %v5526_v33 = vld [vmem:[#allocation4 + $0x848] sm:$0xff]  }
  0xfa   :  { %4855 = vmatprep.subr.bf16.mxu1 %v5479_v39  ;;  %v5527_v38 = vld [vmem:[#allocation4 + $0x8c8] sm:$0xff]  }
  0xfb   :  { %v5528_v39 = vld [vmem:[#allocation4 + $0x808] sm:$0xff]  }
  0xfc   :  { %4834 = vmatpush3.bf16.msra.mxu0 %v5480_v40  ;;  %v5529_v40 = vld [vmem:[#allocation4 + $0x888] sm:$0xff]  }
  0xfd   :  { %4856 = vmatpush3.bf16.msra.mxu1 %v5481_v41  ;;  %4835 = vmatprep.subr.bf16.mxu0 %v5482_v42  ;;  %v5530_v41 = vld [vmem:[#allocation4 + $0x850] sm:$0xff]  }
  0xfe   :  { %4857 = vmatprep.subr.bf16.mxu1 %v5483_v43  ;;  %v5531_v42 = vld [vmem:[#allocation4 + $0x8d0] sm:$0xff]  }
  0xff   :  { %v5532_v43 = vld [vmem:[#allocation4 + $0x810] sm:$0xff]  }
 0x100   :  { %4836 = vmatpush3.bf16.msra.mxu0 %v5484_v44  ;;  %v5533_v44 = vld [vmem:[#allocation4 + $0x890] sm:$0xff]  }
 0x101   :  { %4858 = vmatpush3.bf16.msra.mxu1 %v5485_v45  ;;  %4837 = vmatprep.subr.bf16.mxu0 %v5486_v46  ;;  %v5534_v45 = vld [vmem:[#allocation4 + $0x858] sm:$0xff]  }
 0x102   :  { %4859 = vmatprep.subr.bf16.mxu1 %v5487_v47  ;;  %v5535_v46 = vld [vmem:[#allocation4 + $0x8d8] sm:$0xff]  }
 0x103   :  { %v5537_v47 = vld [vmem:[#allocation4 + $0x898] sm:$0xff]  }
 0x104   :  { %4838 = vmatpush3.bf16.msra.mxu0 %v5488_v48  ;;  %v5539_v48 = vld [vmem:[#allocation4 + $0x8e0] sm:$0xff]  }
 0x105   :  { %4860 = vmatpush3.bf16.msra.mxu1 %v5489_v49  ;;  %4867 = vmatprep.subr.bf16.mxu0 %v5490_v50  ;;  %v5540_v49 = vld [vmem:[#allocation4 + $0x820] sm:$0xff]  }
 0x106   :  { %4889 = vmatprep.subr.bf16.mxu1 %v5491_v51  ;;  %v5541_v50 = vld [vmem:[#allocation4 + $0x8a0] sm:$0xff]   ;;  %v5542_v51 = vld [vmem:[#allocation4 + $0x868] sm:$0xff]  }
 0x107   :  { %2382 = vmatmul.mubr.bf16.vlgmr.msra.gmra.mrb[24].mxu0 %v5744_v36 }
 0x108   :  { %2422 = vmatmul.mubr.bf16.vlgmr.msra.gmra.mrb[24].mxu1 %v5746_v37  ;;  %4868 = vmatpush3.bf16.msra.mxu0 %v5492_v52  ;;  %v5543_v52 = vld [vmem:[#allocation4 + $0x8e8] sm:$0xff]  }
 0x109   :  { %4890 = vmatpush3.bf16.msra.mxu1 %v5493_v53  ;;  %4869 = vmatprep.subr.bf16.mxu0 %v5494_v54 }
 0x10a   :  { %2719 = vmatprep.mubr.bf16.mxu0 %v5740_v34  ;;  %4891 = vmatprep.subr.bf16.mxu1 %v5495_v55  ;;  %v5544_v55 = vld [vmem:[#allocation4 + $0x828] sm:$0xff]  }
 0x10b   :  { %2759 = vmatprep.mubr.bf16.mxu1 %v5742_v35 }
 0x10c   :  { %4870 = vmatpush3.bf16.msra.mxu0 %v5496_v56  ;;  %v5545_v56 = vld [vmem:[#allocation4 + $0x8a8] sm:$0xff]  }
 0x10d   :  { %4892 = vmatpush3.bf16.msra.mxu1 %v5497_v57  ;;  %4871 = vmatprep.subr.bf16.mxu0 %v5498_v58 }
 0x10e   :  { %4893 = vmatprep.subr.bf16.mxu1 %v5499_v59 }
 0x110   :  { %4872 = vmatpush3.bf16.msra.mxu0 %v5500_v60 }
 0x111   :  { %4894 = vmatpush3.bf16.msra.mxu1 %v5501_v61  ;;  %4873 = vmatprep.subr.bf16.mxu0 %v5502_v62 }
 0x112   :  { %4895 = vmatprep.subr.bf16.mxu1 %v5503_v63  ;;  %v5546_v63 = vld [vmem:[#allocation4 + $0x870] sm:$0xff]  }
 0x114   :  { %4874 = vmatpush3.bf16.msra.mxu0 %v5504_v0  ;;  %v5547_v0 = vld [vmem:[#allocation4 + $0x8f0] sm:$0xff]  }
 0x115   :  { %4896 = vmatpush3.bf16.msra.mxu1 %v5505_v1  ;;  %4875 = vmatprep.subr.bf16.mxu0 %v5506_v2 }
 0x116   :  { %4897 = vmatprep.subr.bf16.mxu1 %v5507_v3 }
 0x118   :  { %4876 = vmatpush3.bf16.msra.mxu0 %v5508_v4  ;;  %v5548_v4 = vld [vmem:[#allocation4 + $0x830] sm:$0xff]  }
 0x119   :  { %4898 = vmatpush3.bf16.msra.mxu1 %v5509_v5  ;;  %4877 = vmatprep.subr.bf16.mxu0 %v5510_v6  ;;  %v5549_v5 = vld [vmem:[#allocation4 + $0x8b0] sm:$0xff]  }
 0x11a   :  { %v4575_v8 = vpop.f32.mrb[0].mxu0  ;;  %4899 = vmatprep.subr.bf16.mxu1 %v5511_v7  ;;  %v5550_v7 = vld [vmem:[#allocation4 + $0x878] sm:$0xff]  }
 0x11b   :  { %v4597_v9 = vpop.f32.mrb[0].mxu1  ;;  %v4576_v12 = vpop.f32.mrb[1].mxu0 }
 0x11c   :  { %v4598_v13 = vpop.f32.mrb[1].mxu1  ;;  %v4577_v14 = vadd.f32 %v4576_v12, %v4575_v8  ;;  %v4578_v16 = vpop.f32.mrb[2].mxu0  ;;  %4878 = vmatpush3.bf16.msra.mxu0 %v5512_v10  ;;  %v5551_v8 = vld [vmem:[#allocation4 + $0x8f8] sm:$0xff]  }
 0x11d   :  { %v4599_v15 = vadd.f32 %v4598_v13, %v4597_v9  ;;  %v4600_v17 = vpop.f32.mrb[2].mxu1  ;;  %4900 = vmatpush3.bf16.msra.mxu1 %v5513_v11  ;;  %v4579_v18 = vpop.f32.mrb[3].mxu0  ;;  %4879 = vmatprep.subr.bf16.mxu0 %v5514_v20  ;;  %v5552_v9 = vld [vmem:[#allocation4 + $0x838] sm:$0xff]   ;;  %v5678_v11 = vmov 0.0  }
 0x11e   :  { %v4601_v19 = vpop.f32.mrb[3].mxu1  ;;  %4901 = vmatprep.subr.bf16.mxu1 %v5515_v21  ;;  %v5553_v10 = vld [vmem:[#allocation4 + $0x8b8] sm:$0xff]  }
 0x11f   :  { %v5778_v22 = vadd.f32 %v4599_v15, %v4577_v14 }
 0x120   :  { %4880 = vmatpush3.bf16.msra.mxu0 %v5516_v23 }
 0x121   :  { %4902 = vmatpush3.bf16.msra.mxu1 %v5517_v24  ;;  %4881 = vmatprep.subr.bf16.mxu0 %v5518_v25 }
 0x122   :  { %4903 = vmatprep.subr.bf16.mxu1 %v5519_v26 }
 0x124   :  { %4882 = vmatpush3.bf16.msra.mxu0 %v5520_v27 }
 0x125   :  { %4904 = vmatpush3.bf16.msra.mxu1 %v5521_v28  ;;  %4911 = vmatprep.subr.bf16.mxu0 %v5522_v29 }
 0x126   :  { %4933 = vmatprep.subr.bf16.mxu1 %v5523_v30 }
 0x127   :  { %2720 = vmatmul.mubr.bf16.vlgmr.msra.gmra.mrb[28].mxu0 %v5744_v36 }
 0x128   :  { %2760 = vmatmul.mubr.bf16.vlgmr.msra.gmra.mrb[28].mxu1 %v5746_v37  ;;  %4912 = vmatpush3.bf16.msra.mxu0 %v5524_v31 }
 0x129   :  { %4934 = vmatpush3.bf16.msra.mxu1 %v5525_v32  ;;  %3057 = vmatprep.mubr.bf16.mxu0 %v5740_v34  ;;  %v5536_v34 = vld [vmem:[#allocation4 + $0x818] sm:$0xff]  }
 0x12a   :  { %4913 = vmatprep.subr.bf16.mxu0 %v5526_v33  ;;  %3097 = vmatprep.mubr.bf16.mxu1 %v5742_v35  ;;  %v5538_v35 = vld [vmem:[#allocation4 + $0x860] sm:$0xff]  }
 0x12b   :  { %4935 = vmatprep.subr.bf16.mxu1 %v5527_v38 }
 0x12c   :  { %4914 = vmatpush3.bf16.msra.mxu0 %v5528_v39 }
 0x12d   :  { %4936 = vmatpush3.bf16.msra.mxu1 %v5529_v40  ;;  %4915 = vmatprep.subr.bf16.mxu0 %v5530_v41 }
 0x12e   :  { %4937 = vmatprep.subr.bf16.mxu1 %v5531_v42 }
 0x130   :  { %4916 = vmatpush3.bf16.msra.mxu0 %v5532_v43 }
 0x131   :  { %4938 = vmatpush3.bf16.msra.mxu1 %v5533_v44  ;;  %4917 = vmatprep.subr.bf16.mxu0 %v5534_v45 }
 0x132   :  { %4939 = vmatprep.subr.bf16.mxu1 %v5535_v46 }
 0x134   :  { %4918 = vmatpush3.bf16.msra.mxu0 %v5536_v34 }
 0x135   :  { %4940 = vmatpush3.bf16.msra.mxu1 %v5537_v47  ;;  %4919 = vmatprep.subr.bf16.mxu0 %v5538_v35  ;;  %v5554_v47 = vld [vmem:[#allocation6] sm:$0xff]   ;;  %v5556_v35 = vld [vmem:[#allocation6 + $0x8] sm:$0xff]  }
 0x136   :  { %4941 = vmatprep.subr.bf16.mxu1 %v5539_v48  ;;  %v5558_v48 = vld [vmem:[#allocation6 + $0x10] sm:$0xff]  }
 0x138   :  { %4920 = vmatpush3.bf16.msra.mxu0 %v5540_v49  ;;  %v5560_v49 = vld [vmem:[#allocation6 + $0x18] sm:$0xff]  }
 0x139   :  { %4942 = vmatpush3.bf16.msra.mxu1 %v5541_v50  ;;  %4921 = vmatprep.subr.bf16.mxu0 %v5542_v51  ;;  %v5562_v50 = vld [vmem:[#allocation6 + $0x20] sm:$0xff]   ;;  %v5564_v51 = vld [vmem:[#allocation6 + $0x28] sm:$0xff]  }
 0x13a   :  { %v4619_v53 = vpop.f32.mrb[4].mxu0  ;;  %4943 = vmatprep.subr.bf16.mxu1 %v5543_v52 }
 0x13b   :  { %v4641_v54 = vpop.f32.mrb[4].mxu1  ;;  %v4620_v57 = vpop.f32.mrb[5].mxu0 }
 0x13c   :  { %v4642_v58 = vpop.f32.mrb[5].mxu1  ;;  %v4621_v59 = vadd.f32 %v4620_v57, %v4619_v53  ;;  %v4622_v61 = vpop.f32.mrb[6].mxu0  ;;  %4922 = vmatpush3.bf16.msra.mxu0 %v5544_v55 }
 0x13d   :  { %v4643_v60 = vadd.f32 %v4642_v58, %v4641_v54  ;;  %v4644_v62 = vpop.f32.mrb[6].mxu1  ;;  %4944 = vmatpush3.bf16.msra.mxu1 %v5545_v56  ;;  %v4623_v1 = vpop.f32.mrb[7].mxu0  ;;  %4923 = vmatprep.subr.bf16.mxu0 %v5546_v63 }
 0x13e   :  { %v4645_v2 = vpop.f32.mrb[7].mxu1  ;;  %4945 = vmatprep.subr.bf16.mxu1 %v5547_v0  ;;  %v5566_v62 = vld [vmem:[#allocation6 + $0x30] sm:$0xff]  }
 0x13f   :  { %v734_v3 = vadd.f32 %v4643_v60, %v4621_v59 }
 0x140   :  { %4924 = vmatpush3.bf16.msra.mxu0 %v5548_v4 }
 0x141   :  { %v3116_v6 = vpack.c.bf16 %v734_v3, %v5778_v22  ;;  %4946 = vmatpush3.bf16.msra.mxu1 %v5549_v5  ;;  %4925 = vmatprep.subr.bf16.mxu0 %v5550_v7 }
 0x142   :  { %4947 = vmatprep.subr.bf16.mxu1 %v5551_v8 }
 0x144   :  { %4926 = vmatpush3.bf16.msra.mxu0 %v5552_v9 }
 0x145   :  { %4948 = vmatpush3.bf16.msra.mxu1 %v5553_v10  ;;  %5048 = vmatprep.subr.bf16.mxu0 %v5678_v11 }
 0x146   :  { %5062 = vmatprep.subr.bf16.mxu1 %v5678_v11 }
 0x147   :  { %3058 = vmatmul.mubr.bf16.vlgmr.msra.gmra.mrb[32].mxu0 %v5744_v36 }
 0x148   :  { %3098 = vmatmul.mubr.bf16.vlgmr.msra.gmra.mrb[32].mxu1 %v5746_v37  ;;  %5049 = vmatpush3.bf16.msra.mxu0 %v3116_v6 }
 0x149   :  { %5050 = vmatprep.subr.bf16.mxu0 %v5678_v11  ;;  %5058 = vmatprep.mubr.msk.bf16.mxu0 %vm5679_vm0, %v5678_v11 }
 0x14a   :  { %5078 = vmatprep.mubr.msk.bf16.mxu1 %vm5679_vm0, %v5678_v11  ;;  %5063 = vmatpush3.bf16.msra.mxu1 %v5554_v47  ;;  %v5568_v47 = vld [vmem:[#allocation6 + $0x38] sm:$0xff]  }
 0x14b   :  { %5064 = vmatprep.subr.bf16.mxu1 %v5678_v11 }
 0x14e   :  { %5065 = vmatpush3.bf16.msra.mxu1 %v5556_v35  ;;  %v5569_v35 = vld [vmem:[#allocation6 + $0x78] sm:$0xff]  }
 0x14f   :  { %5066 = vmatprep.subr.bf16.mxu1 %v5678_v11 }
 0x152   :  { %5067 = vmatpush3.bf16.msra.mxu1 %v5558_v48 }
 0x153   :  { %5068 = vmatprep.subr.bf16.mxu1 %v5678_v11 }
 0x156   :  { %5069 = vmatpush3.bf16.msra.mxu1 %v5560_v49 }
 0x157   :  { %5070 = vmatprep.subr.bf16.mxu1 %v5678_v11 }
 0x15a   :  { %v4663_v12 = vpop.f32.mrb[8].mxu0  ;;  %5071 = vmatpush3.bf16.msra.mxu1 %v5562_v50 }
 0x15b   :  { %v4685_v13 = vpop.f32.mrb[8].mxu1  ;;  %v4664_v14 = vpop.f32.mrb[9].mxu0  ;;  %5072 = vmatprep.subr.bf16.mxu1 %v5678_v11 }
 0x15c   :  { %v4686_v15 = vpop.f32.mrb[9].mxu1  ;;  %v4665_v16 = vadd.f32 %v4664_v14, %v4663_v12  ;;  %v4666_v18 = vpop.f32.mrb[10].mxu0 }
 0x15d   :  { %v4687_v17 = vadd.f32 %v4686_v15, %v4685_v13  ;;  %v4688_v19 = vpop.f32.mrb[10].mxu1  ;;  %v4667_v20 = vpop.f32.mrb[11].mxu0 }
 0x15e   :  { %v4689_v21 = vpop.f32.mrb[11].mxu1  ;;  %5073 = vmatpush3.bf16.msra.mxu1 %v5564_v51 }
 0x15f   :  { %v1072_v22 = vadd.f32 %v4687_v17, %v4665_v16  ;;  %5074 = vmatprep.subr.bf16.mxu1 %v5678_v11 }
 0x162   :  { %5075 = vmatpush3.bf16.msra.mxu1 %v5566_v62  ;;  %v5578_v62 = vld [vmem:[#allocation6 + $0xa0] sm:$0xff]  }
 0x163   :  { %5076 = vmatprep.subr.bf16.mxu1 %v5678_v11 }
 0x166   :  { %5077 = vmatpush3.bf16.msra.mxu1 %v5568_v47  ;;  %v5625_v47 = vld [vmem:[#allocation6 + $0x238] sm:$0xff]  }
 0x167   :  { %5102 = vmatprep.subr.bf16.mxu1 %v5678_v11 }
 0x17a   :  { %v4707_v23 = vpop.f32.mrb[12].mxu0 }
 0x17b   :  { %v4729_v24 = vpop.f32.mrb[12].mxu1  ;;  %v4708_v25 = vpop.f32.mrb[13].mxu0 }
 0x17c   :  { %v4730_v36 = vpop.f32.mrb[13].mxu1  ;;  %v4709_v26 = vadd.f32 %v4708_v25, %v4707_v23  ;;  %v4710_v27 = vpop.f32.mrb[14].mxu0 }
 0x17d   :  { %v4731_v37 = vadd.f32 %v4730_v36, %v4729_v24  ;;  %v4732_v28 = vpop.f32.mrb[14].mxu1  ;;  %v4711_v29 = vpop.f32.mrb[15].mxu0 }
 0x17e   :  { %v4733_v30 = vpop.f32.mrb[15].mxu1 }
 0x17f   :  { %v1410_v31 = vadd.f32 %v4731_v37, %v4709_v26 }
 0x181   :  { %v3117_v32 = vpack.c.bf16 %v1410_v31, %v1072_v22 }
 0x183   :  { %5051 = vmatpush3.bf16.msra.mxu0 %v3117_v32 }
 0x184   :  { %5052 = vmatprep.subr.bf16.mxu0 %v5678_v11 }
 0x19a   :  { %v4751_v33 = vpop.f32.mrb[16].mxu0 }
 0x19b   :  { %v4773_v38 = vpop.f32.mrb[16].mxu1  ;;  %v4752_v39 = vpop.f32.mrb[17].mxu0 }
 0x19c   :  { %v4774_v40 = vpop.f32.mrb[17].mxu1  ;;  %v4753_v41 = vadd.f32 %v4752_v39, %v4751_v33  ;;  %v4754_v43 = vpop.f32.mrb[18].mxu0 }
 0x19d   :  { %v4775_v42 = vadd.f32 %v4774_v40, %v4773_v38  ;;  %v4776_v44 = vpop.f32.mrb[18].mxu1  ;;  %v4755_v45 = vpop.f32.mrb[19].mxu0  ;;  %v3106_v40 = vld [vmem:[%s5916_s1] sm:$0xf]  ;;  %v5559_v43 = vld [vmem:[#allocation6 + $0x50] sm:$0xff]  }
 0x19e   :  { %v4777_v46 = vpop.f32.mrb[19].mxu1  ;;  %v5561_v44 = vld [vmem:[#allocation6 + $0x58] sm:$0xff]   ;;  %v5563_v45 = vld [vmem:[#allocation6 + $0x60] sm:$0xff]  }
 0x19f   :  { %v1748_v34 = vadd.f32 %v4775_v42, %v4753_v41  ;;  %v5555_v41 = vld [vmem:[#allocation6 + $0x40] sm:$0xff]   ;;  %v5557_v42 = vld [vmem:[#allocation6 + $0x48] sm:$0xff]  }
 0x1a0   :  { %v5565_v46 = vld [vmem:[#allocation6 + $0x68] sm:$0xff]  }
 0x1ba   :  { %v4795_v52 = vpop.f32.mrb[20].mxu0 }
 0x1bb   :  { %v4817_v53 = vpop.f32.mrb[20].mxu1  ;;  %v4796_v54 = vpop.f32.mrb[21].mxu0 }
 0x1bc   :  { %v4818_v55 = vpop.f32.mrb[21].mxu1  ;;  %v4797_v56 = vadd.f32 %v4796_v54, %v4795_v52  ;;  %v4798_v58 = vpop.f32.mrb[22].mxu0  ;;  %v5570_v52 = vld [vmem:[#allocation6 + $0x80] sm:$0xff]  }
 0x1bd   :  { %v4819_v57 = vadd.f32 %v4818_v55, %v4817_v53  ;;  %v4820_v59 = vpop.f32.mrb[22].mxu1  ;;  %v4799_v60 = vpop.f32.mrb[23].mxu0  ;;  %v5571_v53 = vld [vmem:[#allocation6 + $0xc0] sm:$0xff]   ;;  %v5574_v58 = vld [vmem:[#allocation6 + $0x90] sm:$0xff]  }
 0x1be   :  { %v4821_v61 = vpop.f32.mrb[23].mxu1  ;;  %v5575_v59 = vld [vmem:[#allocation6 + $0xd0] sm:$0xff]   ;;  %v5576_v60 = vld [vmem:[#allocation6 + $0x98] sm:$0xff]  }
 0x1bf   :  { %v2086_v63 = vadd.f32 %v4819_v57, %v4797_v56  ;;  %v5572_v56 = vld [vmem:[#allocation6 + $0x88] sm:$0xff]   ;;  %v5577_v61 = vld [vmem:[#allocation6 + $0xd8] sm:$0xff]  }
 0x1c0   :  { %v5573_v57 = vld [vmem:[#allocation6 + $0xc8] sm:$0xff]  }
 0x1c1   :  { %v3118_v0 = vpack.c.bf16 %v2086_v63, %v1748_v34  ;;  %v5567_v34 = vld [vmem:[#allocation6 + $0x70] sm:$0xff]   ;;  %v5579_v63 = vld [vmem:[#allocation6 + $0xe0] sm:$0xff]  }
 0x1c3   :  { %5053 = vmatpush3.bf16.msra.mxu0 %v3118_v0  ;;  %v5580_v0 = vld [vmem:[#allocation6 + $0xa8] sm:$0xff]  }
 0x1c4   :  { %5054 = vmatprep.subr.bf16.mxu0 %v5678_v11 }
 0x1da   :  { %v4839_v1 = vpop.f32.mrb[24].mxu0 }
 0x1db   :  { %v4861_v2 = vpop.f32.mrb[24].mxu1  ;;  %v4840_v3 = vpop.f32.mrb[25].mxu0 }
 0x1dc   :  { %v4862_v4 = vpop.f32.mrb[25].mxu1  ;;  %v4841_v5 = vadd.f32 %v4840_v3, %v4839_v1  ;;  %v4842_v7 = vpop.f32.mrb[26].mxu0  ;;  %v5581_v1 = vld [vmem:[#allocation6 + $0xe8] sm:$0xff]   ;;  %v5583_v3 = vld [vmem:[#allocation6 + $0xf0] sm:$0xff]  }
 0x1dd   :  { %v4863_v6 = vadd.f32 %v4862_v4, %v4861_v2  ;;  %v4864_v8 = vpop.f32.mrb[26].mxu1  ;;  %v4843_v9 = vpop.f32.mrb[27].mxu0  ;;  %v5582_v2 = vld [vmem:[#allocation6 + $0xb0] sm:$0xff]   ;;  %v5584_v4 = vld [vmem:[#allocation6 + $0xb8] sm:$0xff]   ;;  %v5587_v7 = vld [vmem:[#allocation6 + $0x140] sm:$0xff]  }
 0x1de   :  { %v4865_v10 = vpop.f32.mrb[27].mxu1  ;;  %v5588_v8 = vld [vmem:[#allocation6 + $0x108] sm:$0xff]  }
 0x1df   :  { %v2424_v12 = vadd.f32 %v4863_v6, %v4841_v5  ;;  %v5585_v5 = vld [vmem:[#allocation6 + $0xf8] sm:$0xff]   ;;  %v5586_v6 = vld [vmem:[#allocation6 + $0x100] sm:$0xff]   ;;  %v5589_v9 = vld [vmem:[#allocation6 + $0x148] sm:$0xff]  }
 0x1e0   :  { %v5590_v10 = vld [vmem:[#allocation6 + $0x110] sm:$0xff]  }
 0x1fa   :  { %v4883_v13 = vpop.f32.mrb[28].mxu0 }
 0x1fb   :  { %v4905_v14 = vpop.f32.mrb[28].mxu1  ;;  %v4884_v15 = vpop.f32.mrb[29].mxu0 }
 0x1fc   :  { %v4885_v16 = vadd.f32 %v4884_v15, %v4883_v13  ;;  %v4906_v17 = vpop.f32.mrb[29].mxu1  ;;  %v4886_v18 = vpop.f32.mrb[30].mxu0  ;;  %v5592_v13 = vld [vmem:[#allocation6 + $0x118] sm:$0xff]   ;;  %v5594_v15 = vld [vmem:[#allocation6 + $0x120] sm:$0xff]  }
 0x1fd   :  { %v4907_v19 = vadd.f32 %v4906_v17, %v4905_v14  ;;  %v4908_v20 = vpop.f32.mrb[30].mxu1  ;;  %v4887_v21 = vpop.f32.mrb[31].mxu0  ;;  %v5593_v14 = vld [vmem:[#allocation6 + $0x158] sm:$0xff]   ;;  %v5596_v17 = vld [vmem:[#allocation6 + $0x128] sm:$0xff]  }
 0x1fe   :  { %v4909_v22 = vpop.f32.mrb[31].mxu1  ;;  %v5597_v18 = vld [vmem:[#allocation6 + $0x168] sm:$0xff]   ;;  %v5599_v20 = vld [vmem:[#allocation6 + $0x170] sm:$0xff]   ;;  %v5600_v21 = vld [vmem:[#allocation6 + $0x138] sm:$0xff]  }
 0x1ff   :  { %v2762_v23 = vadd.f32 %v4907_v19, %v4885_v16  ;;  %v5595_v16 = vld [vmem:[#allocation6 + $0x160] sm:$0xff]   ;;  %v5598_v19 = vld [vmem:[#allocation6 + $0x130] sm:$0xff]   ;;  %v5601_v22 = vld [vmem:[#allocation6 + $0x178] sm:$0xff]  }
 0x201   :  { %v3119_v24 = vpack.c.bf16 %v2762_v23, %v2424_v12  ;;  %v5591_v12 = vld [vmem:[#allocation6 + $0x150] sm:$0xff]   ;;  %v5602_v23 = vld [vmem:[#allocation6 + $0x180] sm:$0xff]  }
 0x203   :  { %5055 = vmatpush3.bf16.msra.mxu0 %v3119_v24  ;;  %v5603_v24 = vld [vmem:[#allocation6 + $0x1c0] sm:$0xff]  }
 0x204   :  { %5056 = vmatprep.subr.bf16.mxu0 %v5678_v11 }
 0x21a   :  { %v4927_v25 = vpop.f32.mrb[32].mxu0 }
 0x21b   :  { %v4949_v36 = vpop.f32.mrb[32].mxu1  ;;  %v4928_v26 = vpop.f32.mrb[33].mxu0 }
 0x21c   :  { %v4929_v37 = vadd.f32 %v4928_v26, %v4927_v25  ;;  %v4950_v27 = vpop.f32.mrb[33].mxu1  ;;  %v4930_v28 = vpop.f32.mrb[34].mxu0  ;;  %v5604_v25 = vld [vmem:[#allocation6 + $0x188] sm:$0xff]   ;;  %v5606_v26 = vld [vmem:[#allocation6 + $0x190] sm:$0xff]  }
 0x21d   :  { %v4951_v29 = vadd.f32 %v4950_v27, %v4949_v36  ;;  %v4952_v30 = vpop.f32.mrb[34].mxu1  ;;  %v4931_v31 = vpop.f32.mrb[35].mxu0  ;;  %v5605_v36 = vld [vmem:[#allocation6 + $0x1c8] sm:$0xff]   ;;  %v5608_v27 = vld [vmem:[#allocation6 + $0x198] sm:$0xff]  }
 0x21e   :  { %v4953_v32 = vpop.f32.mrb[35].mxu1  ;;  %v5609_v28 = vld [vmem:[#allocation6 + $0x1d8] sm:$0xff]   ;;  %v5611_v30 = vld [vmem:[#allocation6 + $0x1e0] sm:$0xff]   ;;  %v5612_v31 = vld [vmem:[#allocation6 + $0x1a8] sm:$0xff]  }
 0x21f   :  { %v3100_v33 = vadd.f32 %v4951_v29, %v4929_v37  ;;  %v5607_v37 = vld [vmem:[#allocation6 + $0x1d0] sm:$0xff]   ;;  %v5610_v29 = vld [vmem:[#allocation6 + $0x1a0] sm:$0xff]   ;;  %v5613_v32 = vld [vmem:[#allocation6 + $0x1e8] sm:$0xff]  }
 0x221   :  { %v3120_v38 = vpack.c.bf16 %v3100_v33, %v3100_v33  ;;  %v5614_v33 = vld [vmem:[#allocation6 + $0x1b0] sm:$0xff]  }
 0x223   :  { %v3127_v39 = vsel %vm3125_vm1, %v3120_v38, 0  ;;  %v5615_v38 = vld [vmem:[#allocation6 + $0x1f0] sm:$0xff]  }
 0x224   :  { %5057 = vmatpush3.bf16.msra.mxu0 %v3127_v39  ;;  %v5616_v39 = vld [vmem:[#allocation6 + $0x1b8] sm:$0xff]  }
 0x225   :  { %5082 = vmatprep.subr.bf16.mxu0 %v5678_v11 }
 0x227   :  { %5059 = vmatmul.mubr.msk.bf16.vlgmr.msra.gmra.mrb[36].mxu0 %vm3121_vm2, %v3106_v40  ;;  %v5617_v40 = vld [vmem:[#allocation6 + $0x1f8] sm:$0xff]  }
 0x228   :  { %5083 = vmatpush3.bf16.msra.mxu0 %v5555_v41  ;;  %5098 = vmatprep.mubr.msk.bf16.mxu0 %vm5679_vm0, %v5678_v11  ;;  %v5618_v41 = vld [vmem:[#allocation6 + $0x200] sm:$0xff]  }
 0x229   :  { %5084 = vmatprep.subr.bf16.mxu0 %v5678_v11 }
 0x22c   :  { %5085 = vmatpush3.bf16.msra.mxu0 %v5557_v42  ;;  %v5619_v42 = vld [vmem:[#allocation6 + $0x208] sm:$0xff]  }
 0x22d   :  { %5086 = vmatprep.subr.bf16.mxu0 %v5678_v11 }
 0x230   :  { %5087 = vmatpush3.bf16.msra.mxu0 %v5559_v43  ;;  %v5620_v43 = vld [vmem:[#allocation6 + $0x210] sm:$0xff]  }
 0x231   :  { %5088 = vmatprep.subr.bf16.mxu0 %v5678_v11 }
 0x234   :  { %5089 = vmatpush3.bf16.msra.mxu0 %v5561_v44  ;;  %v5621_v44 = vld [vmem:[#allocation6 + $0x218] sm:$0xff]  }
 0x235   :  { %5090 = vmatprep.subr.bf16.mxu0 %v5678_v11 }
 0x238   :  { %5091 = vmatpush3.bf16.msra.mxu0 %v5563_v45  ;;  %v5622_v45 = vld [vmem:[#allocation6 + $0x220] sm:$0xff]  }
 0x239   :  { %5092 = vmatprep.subr.bf16.mxu0 %v5678_v11 }
 0x23c   :  { %5093 = vmatpush3.bf16.msra.mxu0 %v5565_v46  ;;  %v5623_v46 = vld [vmem:[#allocation6 + $0x228] sm:$0xff]  }
 0x23d   :  { %5094 = vmatprep.subr.bf16.mxu0 %v5678_v11 }
 0x240   :  { %5095 = vmatpush3.bf16.msra.mxu0 %v5567_v34  ;;  %v5624_v34 = vld [vmem:[#allocation6 + $0x230] sm:$0xff]  }
 0x241   :  { %5096 = vmatprep.subr.bf16.mxu0 %v5678_v11 }
 0x244   :  { %5097 = vmatpush3.bf16.msra.mxu0 %v5569_v35 }
 0x245   :  { %5122 = vmatprep.subr.bf16.mxu0 %v5678_v11 }
 0x2fa   :  { %v3163_v48 = vpop.f32.mrb[36].mxu0 }
 0x2fb   :  { %v3169_v49 = vmax.f32 %v3163_v48, 0.0  ;;  %v5060_v50 = vpop.f32.mrb[37].mxu0 }
 0x2fc   :  { %v3166_v51 = vpop.f32.mrb[38].mxu0 }
 0x2fd   :  { %v5821_v54 = vpack.c.bf16 %v3169_v49, %v3169_v49  ;;  %v5061_v55 = vpop.f32.mrb[39].mxu0 }
 0x2ff   :  { %5079 = vmatmul.mubr.bf16.vlgmr.msra.gmra.mrb[36].mxu1 %v5821_v54  ;;  %5099 = vmatmul.mubr.bf16.vlgmr.msra.gmra.mrb[40].mxu0 %v5821_v54 }
 0x300   :  { %5103 = vmatpush3.bf16.msra.mxu1 %v5570_v52  ;;  %5123 = vmatpush3.bf16.msra.mxu0 %v5571_v53 }
 0x301   :  { %5104 = vmatprep.subr.bf16.mxu1 %v5678_v11  ;;  %5124 = vmatprep.subr.bf16.mxu0 %v5678_v11 }
 0x302   :  { %5118 = vmatprep.mubr.msk.bf16.mxu1 %vm5679_vm0, %v5678_v11  ;;  %5138 = vmatprep.mubr.msk.bf16.mxu0 %vm5679_vm0, %v5678_v11 }
 0x304   :  { %5105 = vmatpush3.bf16.msra.mxu1 %v5572_v56  ;;  %5125 = vmatpush3.bf16.msra.mxu0 %v5573_v57 }
 0x305   :  { %5106 = vmatprep.subr.bf16.mxu1 %v5678_v11  ;;  %5126 = vmatprep.subr.bf16.mxu0 %v5678_v11 }
 0x308   :  { %5107 = vmatpush3.bf16.msra.mxu1 %v5574_v58  ;;  %5127 = vmatpush3.bf16.msra.mxu0 %v5575_v59 }
 0x309   :  { %5108 = vmatprep.subr.bf16.mxu1 %v5678_v11  ;;  %5128 = vmatprep.subr.bf16.mxu0 %v5678_v11 }
 0x30c   :  { %5109 = vmatpush3.bf16.msra.mxu1 %v5576_v60  ;;  %5129 = vmatpush3.bf16.msra.mxu0 %v5577_v61 }
 0x30d   :  { %5110 = vmatprep.subr.bf16.mxu1 %v5678_v11  ;;  %5130 = vmatprep.subr.bf16.mxu0 %v5678_v11 }
 0x310   :  { %5111 = vmatpush3.bf16.msra.mxu1 %v5578_v62  ;;  %5131 = vmatpush3.bf16.msra.mxu0 %v5579_v63 }
 0x311   :  { %5112 = vmatprep.subr.bf16.mxu1 %v5678_v11  ;;  %5132 = vmatprep.subr.bf16.mxu0 %v5678_v11 }
 0x314   :  { %5113 = vmatpush3.bf16.msra.mxu1 %v5580_v0  ;;  %5133 = vmatpush3.bf16.msra.mxu0 %v5581_v1 }
 0x315   :  { %5114 = vmatprep.subr.bf16.mxu1 %v5678_v11  ;;  %5134 = vmatprep.subr.bf16.mxu0 %v5678_v11 }
 0x318   :  { %5115 = vmatpush3.bf16.msra.mxu1 %v5582_v2  ;;  %5135 = vmatpush3.bf16.msra.mxu0 %v5583_v3 }
 0x319   :  { %5116 = vmatprep.subr.bf16.mxu1 %v5678_v11  ;;  %5136 = vmatprep.subr.bf16.mxu0 %v5678_v11 }
 0x31c   :  { %5117 = vmatpush3.bf16.msra.mxu1 %v5584_v4  ;;  %5137 = vmatpush3.bf16.msra.mxu0 %v5585_v5 }
 0x31d   :  { %5142 = vmatprep.subr.bf16.mxu1 %v5678_v11  ;;  %5162 = vmatprep.subr.bf16.mxu0 %v5678_v11 }
 0x31f   :  { %5119 = vmatmul.mubr.bf16.vlgmr.msra.gmra.mrb[40].mxu1 %v5821_v54  ;;  %5139 = vmatmul.mubr.bf16.vlgmr.msra.gmra.mrb[44].mxu0 %v5821_v54 }
 0x320   :  { %5143 = vmatpush3.bf16.msra.mxu1 %v5586_v6  ;;  %5163 = vmatpush3.bf16.msra.mxu0 %v5587_v7 }
 0x321   :  { %5144 = vmatprep.subr.bf16.mxu1 %v5678_v11  ;;  %5164 = vmatprep.subr.bf16.mxu0 %v5678_v11 }
 0x322   :  { %5158 = vmatprep.mubr.msk.bf16.mxu1 %vm5679_vm0, %v5678_v11  ;;  %5178 = vmatprep.mubr.msk.bf16.mxu0 %vm5679_vm0, %v5678_v11 }
 0x324   :  { %5145 = vmatpush3.bf16.msra.mxu1 %v5588_v8  ;;  %5165 = vmatpush3.bf16.msra.mxu0 %v5589_v9 }
 0x325   :  { %5146 = vmatprep.subr.bf16.mxu1 %v5678_v11  ;;  %5166 = vmatprep.subr.bf16.mxu0 %v5678_v11 }
 0x328   :  { %5147 = vmatpush3.bf16.msra.mxu1 %v5590_v10  ;;  %5167 = vmatpush3.bf16.msra.mxu0 %v5591_v12 }
 0x329   :  { %5148 = vmatprep.subr.bf16.mxu1 %v5678_v11  ;;  %5168 = vmatprep.subr.bf16.mxu0 %v5678_v11 }
 0x32c   :  { %5149 = vmatpush3.bf16.msra.mxu1 %v5592_v13  ;;  %5169 = vmatpush3.bf16.msra.mxu0 %v5593_v14 }
 0x32d   :  { %5150 = vmatprep.subr.bf16.mxu1 %v5678_v11  ;;  %5170 = vmatprep.subr.bf16.mxu0 %v5678_v11 }
 0x330   :  { %5151 = vmatpush3.bf16.msra.mxu1 %v5594_v15  ;;  %5171 = vmatpush3.bf16.msra.mxu0 %v5595_v16 }
 0x331   :  { %5152 = vmatprep.subr.bf16.mxu1 %v5678_v11  ;;  %5172 = vmatprep.subr.bf16.mxu0 %v5678_v11 }
 0x334   :  { %5153 = vmatpush3.bf16.msra.mxu1 %v5596_v17  ;;  %5173 = vmatpush3.bf16.msra.mxu0 %v5597_v18 }
 0x335   :  { %5154 = vmatprep.subr.bf16.mxu1 %v5678_v11  ;;  %5174 = vmatprep.subr.bf16.mxu0 %v5678_v11 }
 0x338   :  { %5155 = vmatpush3.bf16.msra.mxu1 %v5598_v19  ;;  %5175 = vmatpush3.bf16.msra.mxu0 %v5599_v20 }
 0x339   :  { %5156 = vmatprep.subr.bf16.mxu1 %v5678_v11  ;;  %5176 = vmatprep.subr.bf16.mxu0 %v5678_v11 }
 0x33c   :  { %5157 = vmatpush3.bf16.msra.mxu1 %v5600_v21  ;;  %5177 = vmatpush3.bf16.msra.mxu0 %v5601_v22 }
 0x33d   :  { %5182 = vmatprep.subr.bf16.mxu1 %v5678_v11  ;;  %5202 = vmatprep.subr.bf16.mxu0 %v5678_v11 }
 0x33f   :  { %5159 = vmatmul.mubr.bf16.vlgmr.msra.gmra.mrb[44].mxu1 %v5821_v54  ;;  %5179 = vmatmul.mubr.bf16.vlgmr.msra.gmra.mrb[48].mxu0 %v5821_v54 }
 0x340   :  { %5183 = vmatpush3.bf16.msra.mxu1 %v5602_v23  ;;  %5203 = vmatpush3.bf16.msra.mxu0 %v5603_v24 }
 0x341   :  { %5184 = vmatprep.subr.bf16.mxu1 %v5678_v11  ;;  %5204 = vmatprep.subr.bf16.mxu0 %v5678_v11 }
 0x342   :  { %5198 = vmatprep.mubr.msk.bf16.mxu1 %vm5679_vm0, %v5678_v11  ;;  %5218 = vmatprep.mubr.msk.bf16.mxu0 %vm5679_vm0, %v5678_v11 }
 0x344   :  { %5185 = vmatpush3.bf16.msra.mxu1 %v5604_v25  ;;  %5205 = vmatpush3.bf16.msra.mxu0 %v5605_v36  ;;  %v4124_v36 = vld [vmem:[%s5917_s2] sm:$0xf] }
 0x345   :  { %5186 = vmatprep.subr.bf16.mxu1 %v5678_v11  ;;  %5206 = vmatprep.subr.bf16.mxu0 %v5678_v11 }
 0x348   :  { %5187 = vmatpush3.bf16.msra.mxu1 %v5606_v26  ;;  %5207 = vmatpush3.bf16.msra.mxu0 %v5607_v37 }
 0x349   :  { %5188 = vmatprep.subr.bf16.mxu1 %v5678_v11  ;;  %5208 = vmatprep.subr.bf16.mxu0 %v5678_v11 }
 0x34c   :  { %5189 = vmatpush3.bf16.msra.mxu1 %v5608_v27  ;;  %5209 = vmatpush3.bf16.msra.mxu0 %v5609_v28 }
 0x34d   :  { %5190 = vmatprep.subr.bf16.mxu1 %v5678_v11  ;;  %5210 = vmatprep.subr.bf16.mxu0 %v5678_v11 }
 0x350   :  { %5191 = vmatpush3.bf16.msra.mxu1 %v5610_v29  ;;  %5211 = vmatpush3.bf16.msra.mxu0 %v5611_v30 }
 0x351   :  { %5192 = vmatprep.subr.bf16.mxu1 %v5678_v11  ;;  %5212 = vmatprep.subr.bf16.mxu0 %v5678_v11 }
 0x354   :  { %5193 = vmatpush3.bf16.msra.mxu1 %v5612_v31  ;;  %5213 = vmatpush3.bf16.msra.mxu0 %v5613_v32 }
 0x355   :  { %5194 = vmatprep.subr.bf16.mxu1 %v5678_v11  ;;  %5214 = vmatprep.subr.bf16.mxu0 %v5678_v11 }
 0x358   :  { %5195 = vmatpush3.bf16.msra.mxu1 %v5614_v33  ;;  %5215 = vmatpush3.bf16.msra.mxu0 %v5615_v38 }
 0x359   :  { %5196 = vmatprep.subr.bf16.mxu1 %v5678_v11  ;;  %5216 = vmatprep.subr.bf16.mxu0 %v5678_v11 }
 0x35c   :  { %5197 = vmatpush3.bf16.msra.mxu1 %v5616_v39  ;;  %5217 = vmatpush3.bf16.msra.mxu0 %v5617_v40 }
 0x35d   :  { %5222 = vmatprep.subr.bf16.mxu1 %v5678_v11  ;;  %5242 = vmatprep.subr.bf16.mxu0 %v5678_v11 }
 0x35f   :  { %5199 = vmatmul.mubr.bf16.vlgmr.msra.gmra.mrb[48].mxu1 %v5821_v54  ;;  %5219 = vmatmul.mubr.bf16.vlgmr.msra.gmra.mrb[52].mxu0 %v5821_v54 }
 0x360   :  { %5223 = vmatpush3.bf16.msra.mxu1 %v5618_v41  ;;  %5238 = vmatprep.mubr.msk.bf16.mxu1 %vm5679_vm0, %v5678_v11 }
 0x361   :  { %5224 = vmatprep.subr.bf16.mxu1 %v5678_v11  ;;  %5252 = vmatprep.mubr.msk.bf16.mxu0 %vm5679_vm0, %v5678_v11 }
 0x364   :  { %5225 = vmatpush3.bf16.msra.mxu1 %v5619_v42 }
 0x365   :  { %5226 = vmatprep.subr.bf16.mxu1 %v5678_v11 }
 0x368   :  { %5227 = vmatpush3.bf16.msra.mxu1 %v5620_v43 }
 0x369   :  { %5228 = vmatprep.subr.bf16.mxu1 %v5678_v11 }
 0x36c   :  { %5229 = vmatpush3.bf16.msra.mxu1 %v5621_v44 }
 0x36d   :  { %5230 = vmatprep.subr.bf16.mxu1 %v5678_v11 }
 0x370   :  { %5231 = vmatpush3.bf16.msra.mxu1 %v5622_v45 }
 0x371   :  { %5232 = vmatprep.subr.bf16.mxu1 %v5678_v11 }
 0x374   :  { %5233 = vmatpush3.bf16.msra.mxu1 %v5623_v46 }
 0x375   :  { %5234 = vmatprep.subr.bf16.mxu1 %v5678_v11 }
 0x378   :  { %5235 = vmatpush3.bf16.msra.mxu1 %v5624_v34 }
 0x379   :  { %5236 = vmatprep.subr.bf16.mxu1 %v5678_v11 }
 0x37c   :  { %5237 = vmatpush3.bf16.msra.mxu1 %v5625_v47 }
 0x37f   :  { %5239 = vmatmul.mubr.bf16.vlgmr.msra.gmra.mrb[52].mxu1 %v5821_v54 }
 0x3d2   :  { %v3269_v35 = vpop.f32.mrb[36].mxu1  ;;  %v3375_v48 = vpop.f32.mrb[40].mxu0 }
 0x3d3   :  { %v4134_v49 = vpack.c.bf16 %v3375_v48, %v3269_v35  ;;  %v5080_v50 = vpop.f32.mrb[37].mxu1  ;;  %v5100_v51 = vpop.f32.mrb[41].mxu0 }
 0x3d4   :  { %v3272_v52 = vpop.f32.mrb[38].mxu1  ;;  %v3378_v53 = vpop.f32.mrb[42].mxu0 }
 0x3d5   :  { %v5081_v55 = vpop.f32.mrb[39].mxu1  ;;  %v5101_v56 = vpop.f32.mrb[43].mxu0  ;;  %5243 = vmatpush3.bf16.msra.mxu0 %v4134_v49 }
 0x3d6   :  { %5244 = vmatprep.subr.bf16.mxu0 %v5678_v11 }
 0x3f2   :  { %v3481_v57 = vpop.f32.mrb[40].mxu1  ;;  %v3587_v58 = vpop.f32.mrb[44].mxu0 }
 0x3f3   :  { %v4135_v59 = vpack.c.bf16 %v3587_v58, %v3481_v57  ;;  %v5120_v60 = vpop.f32.mrb[41].mxu1  ;;  %v5140_v61 = vpop.f32.mrb[45].mxu0 }
 0x3f4   :  { %v3484_v62 = vpop.f32.mrb[42].mxu1  ;;  %v3590_v63 = vpop.f32.mrb[46].mxu0 }
 0x3f5   :  { %v5121_v54 = vpop.f32.mrb[43].mxu1  ;;  %v5141_v0 = vpop.f32.mrb[47].mxu0  ;;  %5245 = vmatpush3.bf16.msra.mxu0 %v4135_v59 }
 0x3f6   :  { %5246 = vmatprep.subr.bf16.mxu0 %v5678_v11 }
 0x412   :  { %v3693_v1 = vpop.f32.mrb[44].mxu1  ;;  %v3799_v2 = vpop.f32.mrb[48].mxu0 }
 0x413   :  { %v4136_v3 = vpack.c.bf16 %v3799_v2, %v3693_v1  ;;  %v5160_v4 = vpop.f32.mrb[45].mxu1  ;;  %v5180_v5 = vpop.f32.mrb[49].mxu0 }
 0x414   :  { %v3696_v6 = vpop.f32.mrb[46].mxu1  ;;  %v3802_v7 = vpop.f32.mrb[50].mxu0 }
 0x415   :  { %v5161_v8 = vpop.f32.mrb[47].mxu1  ;;  %v5181_v9 = vpop.f32.mrb[51].mxu0  ;;  %5247 = vmatpush3.bf16.msra.mxu0 %v4136_v3 }
 0x416   :  { %5248 = vmatprep.subr.bf16.mxu0 %v5678_v11 }
 0x432   :  { %v3905_v10 = vpop.f32.mrb[48].mxu1  ;;  %v4011_v12 = vpop.f32.mrb[52].mxu0 }
 0x433   :  { %v4137_v13 = vpack.c.bf16 %v4011_v12, %v3905_v10  ;;  %v5200_v14 = vpop.f32.mrb[49].mxu1  ;;  %v5220_v15 = vpop.f32.mrb[53].mxu0 }
 0x434   :  { %v3908_v16 = vpop.f32.mrb[50].mxu1  ;;  %v4014_v17 = vpop.f32.mrb[54].mxu0 }
 0x435   :  { %v5201_v18 = vpop.f32.mrb[51].mxu1  ;;  %v5221_v19 = vpop.f32.mrb[55].mxu0  ;;  %5249 = vmatpush3.bf16.msra.mxu0 %v4137_v13 }
 0x436   :  { %5250 = vmatprep.subr.bf16.mxu0 %v5678_v11 }
 0x452   :  { %v4117_v20 = vpop.f32.mrb[52].mxu1 }
 0x453   :  { %v4138_v21 = vpack.c.bf16 %v4117_v20, %v4117_v20  ;;  %v5240_v22 = vpop.f32.mrb[53].mxu1 }
 0x454   :  { %v4120_v23 = vpop.f32.mrb[54].mxu1 }
 0x455   :  { %v4143_v24 = vsel %vm3125_vm1, %v4138_v21, 0  ;;  %v5241_v25 = vpop.f32.mrb[55].mxu1 }
 0x456   :  { %5251 = vmatpush3.bf16.msra.mxu0 %v4143_v24 }
 0x459   :  { %5253 = vmatmul.mubr.msk.bf16.vlgmr.msra.gmra.mrb[56].mxu0 %vm3121_vm2, %v4124_v36 }
 0x52c   :  { %v4179_v26 = vpop.f32.mrb[56].mxu0 }
 0x52d   :  { %v4185_v37 = vmax.f32 %v4179_v26, 0.0  ;;  %v5254_v27 = vpop.f32.mrb[57].mxu0 }
 0x52e   :  { %v4182_v28 = vpop.f32.mrb[58].mxu0 }
 0x52f   :  { %4186 = vst [vmem:[%s5920_s5] sm:$0xff] %v4185_v37  ;;  %v5255_v11 = vpop.f32.mrb[59].mxu0 }
 0x530   :  { %4191 = vsyncpa [#allocation5], 1 }
 0x531   :  { %4192 = vsyncpa [#allocation7], 1 }

</bundles_post_ra>
